<compile_context>
chip_gen: v5e
topology: v5e:2x2
jax: 0.10.0
libtpu: 0.0.40
codegen_flags: <defaults>
</compile_context>

<pallas_src>
import functools

import jax
import jax.numpy as jnp
import numpy as np
from jax.experimental import pallas as pl
from jax.experimental.pallas import tpu as pltpu


# ----------------------------------------------------------------------------
# Parameters (deterministic init; mirrors PyTorch Conv2d fan-in uniform bounds)
# ----------------------------------------------------------------------------
def init_cae_params(key, n_features, hidden_size1, hidden_size2):
    specs = [
        # name,  C_in,         C_out,        K
        ("enc0", n_features, hidden_size2, 7),
        ("enc1", hidden_size2, hidden_size1, 3),
        ("enc2", hidden_size1, hidden_size1, 3),
        ("enc3", hidden_size1, hidden_size2, 3),
        ("dec0", hidden_size2, hidden_size2, 3),
        ("dec1", hidden_size2, hidden_size1, 3),
        ("dec2", hidden_size1, hidden_size2, 3),
        ("dec3", hidden_size2, n_features, 3),
    ]
    params = {}
    for i, (name, cin, cout, k) in enumerate(specs):
        kw, kb = jax.random.split(jax.random.fold_in(key, i))
        bound = 1.0 / float(cin * k) ** 0.5
        w = jax.random.uniform(kw, (k, cin, cout), jnp.float32, -bound, bound)
        bvec = jax.random.uniform(kb, (cout,), jnp.float32, -bound, bound)
        params[name] = (w, bvec)
    return params


# ----------------------------------------------------------------------------
# Constant 0/1 time-resampling operators (built once, outside the kernel)
# ----------------------------------------------------------------------------
def _enc_time_mats(t_in, k, stride):
    # valid conv, stride s: S[kk, t*stride + kk, t] = 1
    t_out = (t_in - k) // stride + 1
    s = np.zeros((k, t_in, t_out), np.float32)
    t = np.arange(t_out)
    for kk in range(k):
        s[kk, t * stride + kk, t] = 1.0
    return s, t_out


def _dec_time_mats(t_in, k, up):
    # effective op: nearest-upsample(x, up) -> zero-pad 1 each side -> conv(k, stride 1),
    # computed directly from the compact (un-upsampled) input via source-index math.
    t_up = t_in * up
    t_out = t_up + 2 - k + 1
    s = np.zeros((k, t_in, t_out), np.float32)
    for kk in range(k):
        for t in range(t_out):
            p = t + kk - 1                      # position in un-padded upsampled signal
            if 0 <= p < t_up:
                s[kk, p // up, t] = 1.0
    return s, t_out


def _resize_mat(t_in, t_out):
    # nn.Upsample(size=..., mode='nearest'):  src = floor(dst * t_in / t_out)
    # NOTE: pure 0/1 one-source-per-column selection -> commutes with bias-add & sigmoid,
    # which is what makes folding it into dec3 exact.
    r = np.zeros((t_in, t_out), np.float32)
    t = np.arange(t_out)
    r[(t * t_in) // t_out, t] = 1.0
    return r


def _block_diag(s, bs):
    # [K, Tin, Tout] -> [K, bs*Tin, bs*Tout]  (per-sample blocks along the lane axis)
    k, tin, tout = s.shape
    out = np.zeros((k, bs * tin, bs * tout), np.float32)
    for b in range(bs):
        out[:, b * tin:(b + 1) * tin, b * tout:(b + 1) * tout] = s
    return out


_ENC_CFG = (("enc0", 3), ("enc1", 2), ("enc2", 2), ("enc3", 2))   # (name, stride)
_DEC_CFG = (("dec0", 1), ("dec1", 3), ("dec2", 3), ("dec3", 3))   # (name, upsample factor)
_LAYER_NAMES = tuple(n for n, _ in _ENC_CFG) + tuple(n for n, _ in _DEC_CFG)


def build_cae_operators(params, seq_len, batch_per_step):
    """Pack time operators (block-diag over batch, resize folded into dec3) and the
    channel weights/biases as two flat blobs with static, aligned row offsets."""
    # per-sample time operators
    s_list = []
    t = seq_len
    for name, stride in _ENC_CFG:
        k = params[name][0].shape[0]
        s, t = _enc_time_mats(t, k, stride)
        s_list.append(s)
    t_z = t
    for name, up in _DEC_CFG:
        k = params[name][0].shape[0]
        s, t = _dec_time_mats(t, k, up)
        s_list.append(s)
    # fold the final nearest-resize into dec3's taps (exact: 0/1 selection)
    r = _resize_mat(t, seq_len)
    s_list[-1] = np.einsum("kab,bc->kac", s_list[-1], r)
    # block-diagonalise over the samples handled per grid step (batch-on-lanes)
    s_mats = [jnp.asarray(_block_diag(s, batch_per_step)) for s in s_list]

    # pack channel-mixing weights W'[C_out, K*C_in] + biases into two blobs
    kcins = [params[n][0].shape[0] * params[n][0].shape[1] for n in _LAYER_NAMES]
    max_kcin = max(kcins)
    metas, w_rows, b_rows, off = [], [], [], 0
    for name in _LAYER_NAMES:
        w, b = params[name]                      # w: [K, C_in, C_out]
        k, c_in, c_out = w.shape
        wp = jnp.transpose(w, (2, 0, 1)).reshape(c_out, k * c_in)   # W'[co, k*Cin+ci]
        wp = jnp.pad(wp, ((0, 0), (0, max_kcin - k * c_in)))
        w_rows.append(wp)
        b_rows.append(b.reshape(c_out, 1))
        metas.append((off, c_out, k, c_in))
        off += c_out
    w_blob = jnp.concatenate(w_rows, axis=0)     # [sum C_out, max K*C_in]
    b_blob = jnp.concatenate(b_rows, axis=0)     # [sum C_out, 1]
    return s_mats, w_blob, b_blob, tuple(metas), t_z


# ----------------------------------------------------------------------------
# Fused Pallas kernel: whole CAE forward, time(+batch) on lanes
# ----------------------------------------------------------------------------
def _make_cae_kernel(layer_meta):
    n_layers = len(layer_meta)

    def kernel(x_ref, *refs):
        s_refs = refs[:n_layers]
        w_ref = refs[n_layers]
        b_ref = refs[n_layers + 1]
        xhat_ref = refs[n_layers + 2]
        z_ref = refs[n_layers + 3]

        def conv(h, li, act):
            off, c_out, k, c_in = layer_meta[li]
            s_ref = s_refs[li]
            # Time-resample first: K *independent* MXU dots (no pop->add dependency
            # chain).  Stride / tap-shift / zero-pad / nearest-upsample / final-resize
            # and the per-step batch block-structure are all folded into S[k].
            parts = [jnp.dot(h, s_ref[kk], preferred_element_type=jnp.float32)
                     for kk in range(k)]
            stacked = parts[0] if k == 1 else jnp.concatenate(parts, axis=0)
            # One channel-mixing matmul contracting over K*C_in (static aligned slices
            # into the packed weight/bias blobs).
            out = jnp.dot(w_ref[off:off + c_out, 0:k * c_in], stacked,
                          preferred_element_type=jnp.float32)
            out = out + b_ref[off:off + c_out, :]
            if act == "relu":
                return jnp.maximum(out, 0.0)
            if act == "sigmoid":
                return jax.nn.sigmoid(out)
            return out

        h = x_ref[...].astype(jnp.float32)       # [C_in, Bs*T]  time(+batch) on lanes
        for li in range(4):                      # ----- encoder -----
            h = conv(h, li, "relu")
        z_ref[...] = h.astype(z_ref.dtype)       # latent z

        d = h                                    # ----- decoder -----
        for li in range(4, n_layers - 1):
            d = conv(d, li, "relu")
        # Last decoder conv: the nearest-resize to seq_len is already folded into its
        # S matrices; bias-add and sigmoid commute with that 0/1 selection.
        xhat_ref[...] = conv(d, n_layers - 1, "sigmoid").astype(xhat_ref.dtype)

    return kernel


def cae_forward(s_mats, w_blob, b_blob, x_nchw, *, layer_meta, seq_len, n_features,
                hidden_size2, t_z, num_steps):
    """x_nchw: [B, n_features, seq_len, 1] -> (x_hat [B,nf,seq_len,1], z [B,h2,t_z,1])."""
    b_dim = x_nchw.shape[0]
    assert b_dim % num_steps == 0
    bs = b_dim // num_steps

    # [B, C, T, 1] -> [num_steps, C, Bs*T]  (per-step batch folded onto the lane axis)
    x_steps = (x_nchw[..., 0]
               .reshape(num_steps, bs, n_features, seq_len)
               .transpose(0, 2, 1, 3)
               .reshape(num_steps, n_features, bs * seq_len))

    kernel = _make_cae_kernel(layer_meta)
    const_ops = list(s_mats) + [w_blob, b_blob]

    in_specs = [pl.BlockSpec((None, n_features, bs * seq_len), lambda i: (i, 0, 0))]
    for s in s_mats:
        in_specs.append(pl.BlockSpec(s.shape, lambda i: (0, 0, 0)))
    in_specs.append(pl.BlockSpec(w_blob.shape, lambda i: (0, 0)))
    in_specs.append(pl.BlockSpec(b_blob.shape, lambda i: (0, 0)))

    # Advisory cost estimate (kernel is latency/overhead-bound; no VMEM tuning needed).
    flops = 0
    for li, (_, c_out, k, c_in) in enumerate(layer_meta):
        tin = s_mats[li].shape[1] // bs
        tout = s_mats[li].shape[2] // bs
        flops += b_dim * (2 * k * c_in * tin * tout + 2 * c_out * (k * c_in) * tout)
    const_bytes = 4 * (sum(int(np.prod(s.shape)) for s in s_mats)
                       + int(w_blob.size) + int(b_blob.size))
    io_bytes = 4 * (int(x_steps.size) + b_dim * n_features * seq_len
                    + b_dim * hidden_size2 * t_z)
    cost = pl.CostEstimate(flops=int(flops),
                           transcendentals=int(b_dim * n_features * seq_len),
                           bytes_accessed=int(const_bytes + io_bytes))

    x_hat3, z3 = pl.pallas_call(
        kernel,
        out_shape=(
            jax.ShapeDtypeStruct((num_steps, n_features, bs * seq_len), jnp.float32),
            jax.ShapeDtypeStruct((num_steps, hidden_size2, bs * t_z), jnp.float32),
        ),
        grid=(num_steps,),
        in_specs=in_specs,
        out_specs=(
            pl.BlockSpec((None, n_features, bs * seq_len), lambda i: (i, 0, 0)),
            pl.BlockSpec((None, hidden_size2, bs * t_z), lambda i: (i, 0, 0)),
        ),
        compiler_params=pltpu.CompilerParams(dimension_semantics=("parallel",)),
        cost_estimate=cost,
    )(x_steps, *const_ops)

    x_hat = (x_hat3.reshape(num_steps, n_features, bs, seq_len)
             .transpose(0, 2, 1, 3)
             .reshape(b_dim, n_features, seq_len))[..., None]
    z = (z3.reshape(num_steps, hidden_size2, bs, t_z)
         .transpose(0, 2, 1, 3)
         .reshape(b_dim, hidden_size2, t_z))[..., None]
    return x_hat, z


def _default_num_steps(batch):
    # v7x: 2 TensorCores/chip -> split batch across cores.  v5e/v6e: single TC, so one
    # grid step with the whole batch folded onto lanes is strictly better.
    try:
        kind = jax.devices()[0].device_kind.lower()
    except Exception:
        return 1
    if "v7" in kind and batch % 2 == 0:
        return 2
    return 1


# ----------------------------------------------------------------------------
# Pure-JAX reference mirroring the PyTorch graph op-for-op (for validation only)
# ----------------------------------------------------------------------------
def cae_reference(params, x_nchw, seq_len):
    x = jnp.transpose(x_nchw[..., 0], (0, 2, 1))   # [B, T, C]

    def conv(h, w, bias, stride):
        k = w.shape[0]
        t_out = (h.shape[1] - k) // stride + 1
        acc = jnp.zeros((h.shape[0], t_out, w.shape[2]), jnp.float32)
        for kk in range(k):
            hk = h[:, kk:kk + (t_out - 1) * stride + 1:stride, :]
            acc = acc + jnp.einsum("btc,cd->btd", hk, w[kk])
        return acc + bias

    relu = lambda v: jnp.maximum(v, 0.0)
    pad1 = lambda v: jnp.pad(v, ((0, 0), (1, 1), (0, 0)))

    h = relu(conv(x, *params["enc0"], 3))
    h = relu(conv(h, *params["enc1"], 2))
    h = relu(conv(h, *params["enc2"], 2))
    z = relu(conv(h, *params["enc3"], 2))

    d = relu(conv(pad1(z), *params["dec0"], 1))
    d = jnp.repeat(d, 3, axis=1)
    d = relu(conv(pad1(d), *params["dec1"], 1))
    d = jnp.repeat(d, 3, axis=1)
    d = relu(conv(pad1(d), *params["dec2"], 1))
    d = jnp.repeat(d, 3, axis=1)
    d = conv(pad1(d), *params["dec3"], 1)
    idx = (jnp.arange(seq_len) * d.shape[1]) // seq_len
    d = jax.nn.sigmoid(d[:, idx, :])
    return jnp.transpose(d, (0, 2, 1))[..., None], jnp.transpose(z, (0, 2, 1))[..., None]


# ----------------------------------------------------------------------------
if __name__ == "__main__":
    B = 2
    seq_len = 100
    n_features = 4
    hidden_size1 = 16
    hidden_size2 = 32

    key = jax.random.PRNGKey(0)
    pkey, xkey = jax.random.split(key)
    params = init_cae_params(pkey, n_features, hidden_size1, hidden_size2)
    x = jax.random.uniform(xkey, (B, n_features, seq_len, 1), jnp.float32)

    num_steps = _default_num_steps(B)
    bs = B // num_steps
    s_mats, w_blob, b_blob, layer_meta, t_z = build_cae_operators(params, seq_len, bs)

    fwd = jax.jit(functools.partial(
        cae_forward, layer_meta=layer_meta, seq_len=seq_len, n_features=n_features,
        hidden_size2=hidden_size2, t_z=t_z, num_steps=num_steps))
    x_hat, z = fwd(s_mats, w_blob, b_blob, x)
    jax.block_until_ready((x_hat, z))

    assert x_hat.shape == (B, n_features, seq_len, 1), x_hat.shape
    assert z.shape == (B, hidden_size2, t_z, 1), z.shape
    assert bool(jnp.all(jnp.isfinite(x_hat))) and bool(jnp.all(jnp.isfinite(z)))

    # numerical check against a plain-XLA reference of the PyTorch graph
    x_hat_r, z_r = jax.jit(functools.partial(cae_reference, seq_len=seq_len))(params, x)
    assert bool(jnp.allclose(x_hat, x_hat_r, atol=1e-3, rtol=1e-3)), \
        float(jnp.max(jnp.abs(x_hat - x_hat_r)))
    assert bool(jnp.allclose(z, z_r, atol=1e-3, rtol=1e-3)), \
        float(jnp.max(jnp.abs(z - z_r)))
    print("KERNEL_OK")
</pallas_src>

<mosaic_0001>
module attributes {stable_mosaic.version = 11 : i64} {
  func.func @kernel(%arg0: i32, %arg1: memref<1x4x200xf32, #tpu.memory_space<vmem>>, %arg2: memref<7x200x64xf32, #tpu.memory_space<vmem>>, %arg3: memref<3x64x30xf32, #tpu.memory_space<vmem>>, %arg4: memref<3x30x14xf32, #tpu.memory_space<vmem>>, %arg5: memref<3x14x6xf32, #tpu.memory_space<vmem>>, %arg6: memref<3x6x6xf32, #tpu.memory_space<vmem>>, %arg7: memref<3x6x18xf32, #tpu.memory_space<vmem>>, %arg8: memref<3x18x54xf32, #tpu.memory_space<vmem>>, %arg9: memref<3x54x200xf32, #tpu.memory_space<vmem>>, %arg10: memref<180x96xf32, #tpu.memory_space<vmem>>, %arg11: memref<180x1xf32, #tpu.memory_space<vmem>>, %arg12: memref<1x4x200xf32, #tpu.memory_space<vmem>>, %arg13: memref<1x32x6xf32, #tpu.memory_space<vmem>>) attributes {dimension_semantics = [#tpu.dimension_semantics<parallel>], iteration_bounds = array<i64: 1>, scalar_prefetch = 0 : i64, scratch_operands = 0 : i64, tpu.core_type = #tpu.core_type<tc>, window_params = [{transform_indices = @transform_0, window_bounds = array<i64: 1, 4, 200>}, {pipeline_mode = #tpu.pipeline_mode<synchronous>, transform_indices = @transform_1, window_bounds = array<i64: 7, 200, 64>}, {pipeline_mode = #tpu.pipeline_mode<synchronous>, transform_indices = @transform_2, window_bounds = array<i64: 3, 64, 30>}, {pipeline_mode = #tpu.pipeline_mode<synchronous>, transform_indices = @transform_3, window_bounds = array<i64: 3, 30, 14>}, {pipeline_mode = #tpu.pipeline_mode<synchronous>, transform_indices = @transform_4, window_bounds = array<i64: 3, 14, 6>}, {pipeline_mode = #tpu.pipeline_mode<synchronous>, transform_indices = @transform_5, window_bounds = array<i64: 3, 6, 6>}, {pipeline_mode = #tpu.pipeline_mode<synchronous>, transform_indices = @transform_6, window_bounds = array<i64: 3, 6, 18>}, {pipeline_mode = #tpu.pipeline_mode<synchronous>, transform_indices = @transform_7, window_bounds = array<i64: 3, 18, 54>}, {pipeline_mode = #tpu.pipeline_mode<synchronous>, transform_indices = @transform_8, window_bounds = array<i64: 3, 54, 200>}, {pipeline_mode = #tpu.pipeline_mode<synchronous>, transform_indices = @transform_9, window_bounds = array<i64: 180, 96>}, {pipeline_mode = #tpu.pipeline_mode<synchronous>, transform_indices = @transform_10, window_bounds = array<i64: 180, 1>}, {transform_indices = @transform_11, window_bounds = array<i64: 1, 4, 200>}, {transform_indices = @transform_12, window_bounds = array<i64: 1, 32, 6>}]} {
    %c0 = arith.constant 0 : index
    %c0_0 = arith.constant 0 : index
    %c0_1 = arith.constant 0 : index
    %0 = vector.load %arg1[%c0, %c0_0, %c0_1] : memref<1x4x200xf32, #tpu.memory_space<vmem>>, vector<1x4x200xf32>
    %1 = vector.shape_cast %0 : vector<1x4x200xf32> to vector<4x200xf32>
    %c0_2 = arith.constant 0 : index
    %c0_3 = arith.constant 0 : index
    %c0_4 = arith.constant 0 : index
    %2 = vector.load %arg2[%c0_2, %c0_3, %c0_4] : memref<7x200x64xf32, #tpu.memory_space<vmem>>, vector<1x200x64xf32>
    %3 = vector.shape_cast %2 : vector<1x200x64xf32> to vector<200x64xf32>
    %cst = arith.constant dense<0.000000e+00> : vector<4x64xf32>
    %4 = tpu.matmul %1, %3, %cst {dimension_numbers = #tpu.dot_dimension_numbers<[1], [0], [0], [1], [0, 0, 1, 1], [], []>} : vector<4x200xf32>, vector<200x64xf32>, vector<4x64xf32> -> vector<4x64xf32>
    %c1 = arith.constant 1 : index
    %c0_5 = arith.constant 0 : index
    %c0_6 = arith.constant 0 : index
    %5 = vector.load %arg2[%c1, %c0_5, %c0_6] : memref<7x200x64xf32, #tpu.memory_space<vmem>>, vector<1x200x64xf32>
    %6 = vector.shape_cast %5 : vector<1x200x64xf32> to vector<200x64xf32>
    %cst_7 = arith.constant dense<0.000000e+00> : vector<4x64xf32>
    %7 = tpu.matmul %1, %6, %cst_7 {dimension_numbers = #tpu.dot_dimension_numbers<[1], [0], [0], [1], [0, 0, 1, 1], [], []>} : vector<4x200xf32>, vector<200x64xf32>, vector<4x64xf32> -> vector<4x64xf32>
    %c2 = arith.constant 2 : index
    %c0_8 = arith.constant 0 : index
    %c0_9 = arith.constant 0 : index
    %8 = vector.load %arg2[%c2, %c0_8, %c0_9] : memref<7x200x64xf32, #tpu.memory_space<vmem>>, vector<1x200x64xf32>
    %9 = vector.shape_cast %8 : vector<1x200x64xf32> to vector<200x64xf32>
    %cst_10 = arith.constant dense<0.000000e+00> : vector<4x64xf32>
    %10 = tpu.matmul %1, %9, %cst_10 {dimension_numbers = #tpu.dot_dimension_numbers<[1], [0], [0], [1], [0, 0, 1, 1], [], []>} : vector<4x200xf32>, vector<200x64xf32>, vector<4x64xf32> -> vector<4x64xf32>
    %c3 = arith.constant 3 : index
    %c0_11 = arith.constant 0 : index
    %c0_12 = arith.constant 0 : index
    %11 = vector.load %arg2[%c3, %c0_11, %c0_12] : memref<7x200x64xf32, #tpu.memory_space<vmem>>, vector<1x200x64xf32>
    %12 = vector.shape_cast %11 : vector<1x200x64xf32> to vector<200x64xf32>
    %cst_13 = arith.constant dense<0.000000e+00> : vector<4x64xf32>
    %13 = tpu.matmul %1, %12, %cst_13 {dimension_numbers = #tpu.dot_dimension_numbers<[1], [0], [0], [1], [0, 0, 1, 1], [], []>} : vector<4x200xf32>, vector<200x64xf32>, vector<4x64xf32> -> vector<4x64xf32>
    %c4 = arith.constant 4 : index
    %c0_14 = arith.constant 0 : index
    %c0_15 = arith.constant 0 : index
    %14 = vector.load %arg2[%c4, %c0_14, %c0_15] : memref<7x200x64xf32, #tpu.memory_space<vmem>>, vector<1x200x64xf32>
    %15 = vector.shape_cast %14 : vector<1x200x64xf32> to vector<200x64xf32>
    %cst_16 = arith.constant dense<0.000000e+00> : vector<4x64xf32>
    %16 = tpu.matmul %1, %15, %cst_16 {dimension_numbers = #tpu.dot_dimension_numbers<[1], [0], [0], [1], [0, 0, 1, 1], [], []>} : vector<4x200xf32>, vector<200x64xf32>, vector<4x64xf32> -> vector<4x64xf32>
    %c5 = arith.constant 5 : index
    %c0_17 = arith.constant 0 : index
    %c0_18 = arith.constant 0 : index
    %17 = vector.load %arg2[%c5, %c0_17, %c0_18] : memref<7x200x64xf32, #tpu.memory_space<vmem>>, vector<1x200x64xf32>
    %18 = vector.shape_cast %17 : vector<1x200x64xf32> to vector<200x64xf32>
    %cst_19 = arith.constant dense<0.000000e+00> : vector<4x64xf32>
    %19 = tpu.matmul %1, %18, %cst_19 {dimension_numbers = #tpu.dot_dimension_numbers<[1], [0], [0], [1], [0, 0, 1, 1], [], []>} : vector<4x200xf32>, vector<200x64xf32>, vector<4x64xf32> -> vector<4x64xf32>
    %c6 = arith.constant 6 : index
    %c0_20 = arith.constant 0 : index
    %c0_21 = arith.constant 0 : index
    %20 = vector.load %arg2[%c6, %c0_20, %c0_21] : memref<7x200x64xf32, #tpu.memory_space<vmem>>, vector<1x200x64xf32>
    %21 = vector.shape_cast %20 : vector<1x200x64xf32> to vector<200x64xf32>
    %cst_22 = arith.constant dense<0.000000e+00> : vector<4x64xf32>
    %22 = tpu.matmul %1, %21, %cst_22 {dimension_numbers = #tpu.dot_dimension_numbers<[1], [0], [0], [1], [0, 0, 1, 1], [], []>} : vector<4x200xf32>, vector<200x64xf32>, vector<4x64xf32> -> vector<4x64xf32>
    %23 = tpu.concatenate %4, %7, %10, %13, %16, %19, %22 in 0 : vector<4x64xf32>, vector<4x64xf32>, vector<4x64xf32>, vector<4x64xf32>, vector<4x64xf32>, vector<4x64xf32>, vector<4x64xf32> -> vector<28x64xf32>
    %c0_23 = arith.constant 0 : index
    %c0_24 = arith.constant 0 : index
    %24 = vector.load %arg10[%c0_23, %c0_24] : memref<180x96xf32, #tpu.memory_space<vmem>>, vector<32x28xf32>
    %cst_25 = arith.constant dense<0.000000e+00> : vector<32x64xf32>
    %25 = tpu.matmul %24, %23, %cst_25 {dimension_numbers = #tpu.dot_dimension_numbers<[1], [0], [0], [1], [0, 0, 1, 1], [], []>} : vector<32x28xf32>, vector<28x64xf32>, vector<32x64xf32> -> vector<32x64xf32>
    %c0_26 = arith.constant 0 : index
    %c0_27 = arith.constant 0 : index
    %26 = vector.load %arg11[%c0_26, %c0_27] : memref<180x1xf32, #tpu.memory_space<vmem>>, vector<32x1xf32>
    %27 = vector.broadcast %26 : vector<32x1xf32> to vector<32x64xf32>
    %28 = arith.addf %25, %27 : vector<32x64xf32>
    %cst_28 = arith.constant 0.000000e+00 : f32
    %29 = vector.broadcast %cst_28 : f32 to vector<32x64xf32>
    %30 = arith.maximumf %28, %29 : vector<32x64xf32>
    %c0_29 = arith.constant 0 : index
    %c0_30 = arith.constant 0 : index
    %c0_31 = arith.constant 0 : index
    %31 = vector.load %arg3[%c0_29, %c0_30, %c0_31] : memref<3x64x30xf32, #tpu.memory_space<vmem>>, vector<1x64x30xf32>
    %32 = vector.shape_cast %31 : vector<1x64x30xf32> to vector<64x30xf32>
    %cst_32 = arith.constant dense<0.000000e+00> : vector<32x30xf32>
    %33 = tpu.matmul %30, %32, %cst_32 {dimension_numbers = #tpu.dot_dimension_numbers<[1], [0], [0], [1], [0, 0, 1, 1], [], []>} : vector<32x64xf32>, vector<64x30xf32>, vector<32x30xf32> -> vector<32x30xf32>
    %c1_33 = arith.constant 1 : index
    %c0_34 = arith.constant 0 : index
    %c0_35 = arith.constant 0 : index
    %34 = vector.load %arg3[%c1_33, %c0_34, %c0_35] : memref<3x64x30xf32, #tpu.memory_space<vmem>>, vector<1x64x30xf32>
    %35 = vector.shape_cast %34 : vector<1x64x30xf32> to vector<64x30xf32>
    %cst_36 = arith.constant dense<0.000000e+00> : vector<32x30xf32>
    %36 = tpu.matmul %30, %35, %cst_36 {dimension_numbers = #tpu.dot_dimension_numbers<[1], [0], [0], [1], [0, 0, 1, 1], [], []>} : vector<32x64xf32>, vector<64x30xf32>, vector<32x30xf32> -> vector<32x30xf32>
    %c2_37 = arith.constant 2 : index
    %c0_38 = arith.constant 0 : index
    %c0_39 = arith.constant 0 : index
    %37 = vector.load %arg3[%c2_37, %c0_38, %c0_39] : memref<3x64x30xf32, #tpu.memory_space<vmem>>, vector<1x64x30xf32>
    %38 = vector.shape_cast %37 : vector<1x64x30xf32> to vector<64x30xf32>
    %cst_40 = arith.constant dense<0.000000e+00> : vector<32x30xf32>
    %39 = tpu.matmul %30, %38, %cst_40 {dimension_numbers = #tpu.dot_dimension_numbers<[1], [0], [0], [1], [0, 0, 1, 1], [], []>} : vector<32x64xf32>, vector<64x30xf32>, vector<32x30xf32> -> vector<32x30xf32>
    %40 = tpu.concatenate %33, %36, %39 in 0 : vector<32x30xf32>, vector<32x30xf32>, vector<32x30xf32> -> vector<96x30xf32>
    %c32 = arith.constant 32 : index
    %c0_41 = arith.constant 0 : index
    %41 = vector.load %arg10[%c32, %c0_41] : memref<180x96xf32, #tpu.memory_space<vmem>>, vector<16x96xf32>
    %cst_42 = arith.constant dense<0.000000e+00> : vector<16x30xf32>
    %42 = tpu.matmul %41, %40, %cst_42 {dimension_numbers = #tpu.dot_dimension_numbers<[1], [0], [0], [1], [0, 0, 1, 1], [], []>} : vector<16x96xf32>, vector<96x30xf32>, vector<16x30xf32> -> vector<16x30xf32>
    %c32_43 = arith.constant 32 : index
    %c0_44 = arith.constant 0 : index
    %43 = vector.load %arg11[%c32_43, %c0_44] : memref<180x1xf32, #tpu.memory_space<vmem>>, vector<16x1xf32>
    %44 = vector.broadcast %43 : vector<16x1xf32> to vector<16x30xf32>
    %45 = arith.addf %42, %44 : vector<16x30xf32>
    %cst_45 = arith.constant 0.000000e+00 : f32
    %46 = vector.broadcast %cst_45 : f32 to vector<16x30xf32>
    %47 = arith.maximumf %45, %46 : vector<16x30xf32>
    %c0_46 = arith.constant 0 : index
    %c0_47 = arith.constant 0 : index
    %c0_48 = arith.constant 0 : index
    %48 = vector.load %arg4[%c0_46, %c0_47, %c0_48] : memref<3x30x14xf32, #tpu.memory_space<vmem>>, vector<1x30x14xf32>
    %49 = vector.shape_cast %48 : vector<1x30x14xf32> to vector<30x14xf32>
    %cst_49 = arith.constant dense<0.000000e+00> : vector<16x14xf32>
    %50 = tpu.matmul %47, %49, %cst_49 {dimension_numbers = #tpu.dot_dimension_numbers<[1], [0], [0], [1], [0, 0, 1, 1], [], []>} : vector<16x30xf32>, vector<30x14xf32>, vector<16x14xf32> -> vector<16x14xf32>
    %c1_50 = arith.constant 1 : index
    %c0_51 = arith.constant 0 : index
    %c0_52 = arith.constant 0 : index
    %51 = vector.load %arg4[%c1_50, %c0_51, %c0_52] : memref<3x30x14xf32, #tpu.memory_space<vmem>>, vector<1x30x14xf32>
    %52 = vector.shape_cast %51 : vector<1x30x14xf32> to vector<30x14xf32>
    %cst_53 = arith.constant dense<0.000000e+00> : vector<16x14xf32>
    %53 = tpu.matmul %47, %52, %cst_53 {dimension_numbers = #tpu.dot_dimension_numbers<[1], [0], [0], [1], [0, 0, 1, 1], [], []>} : vector<16x30xf32>, vector<30x14xf32>, vector<16x14xf32> -> vector<16x14xf32>
    %c2_54 = arith.constant 2 : index
    %c0_55 = arith.constant 0 : index
    %c0_56 = arith.constant 0 : index
    %54 = vector.load %arg4[%c2_54, %c0_55, %c0_56] : memref<3x30x14xf32, #tpu.memory_space<vmem>>, vector<1x30x14xf32>
    %55 = vector.shape_cast %54 : vector<1x30x14xf32> to vector<30x14xf32>
    %cst_57 = arith.constant dense<0.000000e+00> : vector<16x14xf32>
    %56 = tpu.matmul %47, %55, %cst_57 {dimension_numbers = #tpu.dot_dimension_numbers<[1], [0], [0], [1], [0, 0, 1, 1], [], []>} : vector<16x30xf32>, vector<30x14xf32>, vector<16x14xf32> -> vector<16x14xf32>
    %57 = tpu.concatenate %50, %53, %56 in 0 : vector<16x14xf32>, vector<16x14xf32>, vector<16x14xf32> -> vector<48x14xf32>
    %c48 = arith.constant 48 : index
    %c0_58 = arith.constant 0 : index
    %58 = vector.load %arg10[%c48, %c0_58] : memref<180x96xf32, #tpu.memory_space<vmem>>, vector<16x48xf32>
    %cst_59 = arith.constant dense<0.000000e+00> : vector<16x14xf32>
    %59 = tpu.matmul %58, %57, %cst_59 {dimension_numbers = #tpu.dot_dimension_numbers<[1], [0], [0], [1], [0, 0, 1, 1], [], []>} : vector<16x48xf32>, vector<48x14xf32>, vector<16x14xf32> -> vector<16x14xf32>
    %c48_60 = arith.constant 48 : index
    %c0_61 = arith.constant 0 : index
    %60 = vector.load %arg11[%c48_60, %c0_61] : memref<180x1xf32, #tpu.memory_space<vmem>>, vector<16x1xf32>
    %61 = vector.broadcast %60 : vector<16x1xf32> to vector<16x14xf32>
    %62 = arith.addf %59, %61 : vector<16x14xf32>
    %cst_62 = arith.constant 0.000000e+00 : f32
    %63 = vector.broadcast %cst_62 : f32 to vector<16x14xf32>
    %64 = arith.maximumf %62, %63 : vector<16x14xf32>
    %c0_63 = arith.constant 0 : index
    %c0_64 = arith.constant 0 : index
    %c0_65 = arith.constant 0 : index
    %65 = vector.load %arg5[%c0_63, %c0_64, %c0_65] : memref<3x14x6xf32, #tpu.memory_space<vmem>>, vector<1x14x6xf32>
    %66 = vector.shape_cast %65 : vector<1x14x6xf32> to vector<14x6xf32>
    %cst_66 = arith.constant dense<0.000000e+00> : vector<16x6xf32>
    %67 = tpu.matmul %64, %66, %cst_66 {dimension_numbers = #tpu.dot_dimension_numbers<[1], [0], [0], [1], [0, 0, 1, 1], [], []>} : vector<16x14xf32>, vector<14x6xf32>, vector<16x6xf32> -> vector<16x6xf32>
    %c1_67 = arith.constant 1 : index
    %c0_68 = arith.constant 0 : index
    %c0_69 = arith.constant 0 : index
    %68 = vector.load %arg5[%c1_67, %c0_68, %c0_69] : memref<3x14x6xf32, #tpu.memory_space<vmem>>, vector<1x14x6xf32>
    %69 = vector.shape_cast %68 : vector<1x14x6xf32> to vector<14x6xf32>
    %cst_70 = arith.constant dense<0.000000e+00> : vector<16x6xf32>
    %70 = tpu.matmul %64, %69, %cst_70 {dimension_numbers = #tpu.dot_dimension_numbers<[1], [0], [0], [1], [0, 0, 1, 1], [], []>} : vector<16x14xf32>, vector<14x6xf32>, vector<16x6xf32> -> vector<16x6xf32>
    %c2_71 = arith.constant 2 : index
    %c0_72 = arith.constant 0 : index
    %c0_73 = arith.constant 0 : index
    %71 = vector.load %arg5[%c2_71, %c0_72, %c0_73] : memref<3x14x6xf32, #tpu.memory_space<vmem>>, vector<1x14x6xf32>
    %72 = vector.shape_cast %71 : vector<1x14x6xf32> to vector<14x6xf32>
    %cst_74 = arith.constant dense<0.000000e+00> : vector<16x6xf32>
    %73 = tpu.matmul %64, %72, %cst_74 {dimension_numbers = #tpu.dot_dimension_numbers<[1], [0], [0], [1], [0, 0, 1, 1], [], []>} : vector<16x14xf32>, vector<14x6xf32>, vector<16x6xf32> -> vector<16x6xf32>
    %74 = tpu.concatenate %67, %70, %73 in 0 : vector<16x6xf32>, vector<16x6xf32>, vector<16x6xf32> -> vector<48x6xf32>
    %c64 = arith.constant 64 : index
    %c0_75 = arith.constant 0 : index
    %75 = vector.load %arg10[%c64, %c0_75] : memref<180x96xf32, #tpu.memory_space<vmem>>, vector<32x48xf32>
    %cst_76 = arith.constant dense<0.000000e+00> : vector<32x6xf32>
    %76 = tpu.matmul %75, %74, %cst_76 {dimension_numbers = #tpu.dot_dimension_numbers<[1], [0], [0], [1], [0, 0, 1, 1], [], []>} : vector<32x48xf32>, vector<48x6xf32>, vector<32x6xf32> -> vector<32x6xf32>
    %c64_77 = arith.constant 64 : index
    %c0_78 = arith.constant 0 : index
    %77 = vector.load %arg11[%c64_77, %c0_78] : memref<180x1xf32, #tpu.memory_space<vmem>>, vector<32x1xf32>
    %78 = vector.broadcast %77 : vector<32x1xf32> to vector<32x6xf32>
    %79 = arith.addf %76, %78 : vector<32x6xf32>
    %cst_79 = arith.constant 0.000000e+00 : f32
    %80 = vector.broadcast %cst_79 : f32 to vector<32x6xf32>
    %81 = arith.maximumf %79, %80 : vector<32x6xf32>
    %c0_80 = arith.constant 0 : index
    %c0_81 = arith.constant 0 : index
    %c0_82 = arith.constant 0 : index
    %82 = vector.load %arg13[%c0_80, %c0_81, %c0_82] : memref<1x32x6xf32, #tpu.memory_space<vmem>>, vector<1x32x6xf32>
    %83 = vector.shape_cast %82 : vector<1x32x6xf32> to vector<32x6xf32>
    %84 = vector.shape_cast %81 : vector<32x6xf32> to vector<1x32x6xf32>
    tpu.vector_store %arg13[%c0_80, %c0_81, %c0_82], %84 {strides = array<i32>} : memref<1x32x6xf32, #tpu.memory_space<vmem>>, vector<1x32x6xf32>,
    %c0_83 = arith.constant 0 : index
    %c0_84 = arith.constant 0 : index
    %c0_85 = arith.constant 0 : index
    %85 = vector.load %arg6[%c0_83, %c0_84, %c0_85] : memref<3x6x6xf32, #tpu.memory_space<vmem>>, vector<1x6x6xf32>
    %86 = vector.shape_cast %85 : vector<1x6x6xf32> to vector<6x6xf32>
    %cst_86 = arith.constant dense<0.000000e+00> : vector<32x6xf32>
    %87 = tpu.matmul %81, %86, %cst_86 {dimension_numbers = #tpu.dot_dimension_numbers<[1], [0], [0], [1], [0, 0, 1, 1], [], []>} : vector<32x6xf32>, vector<6x6xf32>, vector<32x6xf32> -> vector<32x6xf32>
    %c1_87 = arith.constant 1 : index
    %c0_88 = arith.constant 0 : index
    %c0_89 = arith.constant 0 : index
    %88 = vector.load %arg6[%c1_87, %c0_88, %c0_89] : memref<3x6x6xf32, #tpu.memory_space<vmem>>, vector<1x6x6xf32>
    %89 = vector.shape_cast %88 : vector<1x6x6xf32> to vector<6x6xf32>
    %cst_90 = arith.constant dense<0.000000e+00> : vector<32x6xf32>
    %90 = tpu.matmul %81, %89, %cst_90 {dimension_numbers = #tpu.dot_dimension_numbers<[1], [0], [0], [1], [0, 0, 1, 1], [], []>} : vector<32x6xf32>, vector<6x6xf32>, vector<32x6xf32> -> vector<32x6xf32>
    %c2_91 = arith.constant 2 : index
    %c0_92 = arith.constant 0 : index
    %c0_93 = arith.constant 0 : index
    %91 = vector.load %arg6[%c2_91, %c0_92, %c0_93] : memref<3x6x6xf32, #tpu.memory_space<vmem>>, vector<1x6x6xf32>
    %92 = vector.shape_cast %91 : vector<1x6x6xf32> to vector<6x6xf32>
    %cst_94 = arith.constant dense<0.000000e+00> : vector<32x6xf32>
    %93 = tpu.matmul %81, %92, %cst_94 {dimension_numbers = #tpu.dot_dimension_numbers<[1], [0], [0], [1], [0, 0, 1, 1], [], []>} : vector<32x6xf32>, vector<6x6xf32>, vector<32x6xf32> -> vector<32x6xf32>
    %94 = tpu.concatenate %87, %90, %93 in 0 : vector<32x6xf32>, vector<32x6xf32>, vector<32x6xf32> -> vector<96x6xf32>
    %c96 = arith.constant 96 : index
    %c0_95 = arith.constant 0 : index
    %95 = vector.load %arg10[%c96, %c0_95] : memref<180x96xf32, #tpu.memory_space<vmem>>, vector<32x96xf32>
    %cst_96 = arith.constant dense<0.000000e+00> : vector<32x6xf32>
    %96 = tpu.matmul %95, %94, %cst_96 {dimension_numbers = #tpu.dot_dimension_numbers<[1], [0], [0], [1], [0, 0, 1, 1], [], []>} : vector<32x96xf32>, vector<96x6xf32>, vector<32x6xf32> -> vector<32x6xf32>
    %c96_97 = arith.constant 96 : index
    %c0_98 = arith.constant 0 : index
    %97 = vector.load %arg11[%c96_97, %c0_98] : memref<180x1xf32, #tpu.memory_space<vmem>>, vector<32x1xf32>
    %98 = vector.broadcast %97 : vector<32x1xf32> to vector<32x6xf32>
    %99 = arith.addf %96, %98 : vector<32x6xf32>
    %cst_99 = arith.constant 0.000000e+00 : f32
    %100 = vector.broadcast %cst_99 : f32 to vector<32x6xf32>
    %101 = arith.maximumf %99, %100 : vector<32x6xf32>
    %c0_100 = arith.constant 0 : index
    %c0_101 = arith.constant 0 : index
    %c0_102 = arith.constant 0 : index
    %102 = vector.load %arg7[%c0_100, %c0_101, %c0_102] : memref<3x6x18xf32, #tpu.memory_space<vmem>>, vector<1x6x18xf32>
    %103 = vector.shape_cast %102 : vector<1x6x18xf32> to vector<6x18xf32>
    %cst_103 = arith.constant dense<0.000000e+00> : vector<32x18xf32>
    %104 = tpu.matmul %101, %103, %cst_103 {dimension_numbers = #tpu.dot_dimension_numbers<[1], [0], [0], [1], [0, 0, 1, 1], [], []>} : vector<32x6xf32>, vector<6x18xf32>, vector<32x18xf32> -> vector<32x18xf32>
    %c1_104 = arith.constant 1 : index
    %c0_105 = arith.constant 0 : index
    %c0_106 = arith.constant 0 : index
    %105 = vector.load %arg7[%c1_104, %c0_105, %c0_106] : memref<3x6x18xf32, #tpu.memory_space<vmem>>, vector<1x6x18xf32>
    %106 = vector.shape_cast %105 : vector<1x6x18xf32> to vector<6x18xf32>
    %cst_107 = arith.constant dense<0.000000e+00> : vector<32x18xf32>
    %107 = tpu.matmul %101, %106, %cst_107 {dimension_numbers = #tpu.dot_dimension_numbers<[1], [0], [0], [1], [0, 0, 1, 1], [], []>} : vector<32x6xf32>, vector<6x18xf32>, vector<32x18xf32> -> vector<32x18xf32>
    %c2_108 = arith.constant 2 : index
    %c0_109 = arith.constant 0 : index
    %c0_110 = arith.constant 0 : index
    %108 = vector.load %arg7[%c2_108, %c0_109, %c0_110] : memref<3x6x18xf32, #tpu.memory_space<vmem>>, vector<1x6x18xf32>
    %109 = vector.shape_cast %108 : vector<1x6x18xf32> to vector<6x18xf32>
    %cst_111 = arith.constant dense<0.000000e+00> : vector<32x18xf32>
    %110 = tpu.matmul %101, %109, %cst_111 {dimension_numbers = #tpu.dot_dimension_numbers<[1], [0], [0], [1], [0, 0, 1, 1], [], []>} : vector<32x6xf32>, vector<6x18xf32>, vector<32x18xf32> -> vector<32x18xf32>
    %111 = tpu.concatenate %104, %107, %110 in 0 : vector<32x18xf32>, vector<32x18xf32>, vector<32x18xf32> -> vector<96x18xf32>
    %c128 = arith.constant 128 : index
    %c0_112 = arith.constant 0 : index
    %112 = vector.load %arg10[%c128, %c0_112] : memref<180x96xf32, #tpu.memory_space<vmem>>, vector<16x96xf32>
    %cst_113 = arith.constant dense<0.000000e+00> : vector<16x18xf32>
    %113 = tpu.matmul %112, %111, %cst_113 {dimension_numbers = #tpu.dot_dimension_numbers<[1], [0], [0], [1], [0, 0, 1, 1], [], []>} : vector<16x96xf32>, vector<96x18xf32>, vector<16x18xf32> -> vector<16x18xf32>
    %c128_114 = arith.constant 128 : index
    %c0_115 = arith.constant 0 : index
    %114 = vector.load %arg11[%c128_114, %c0_115] : memref<180x1xf32, #tpu.memory_space<vmem>>, vector<16x1xf32>
    %115 = vector.broadcast %114 : vector<16x1xf32> to vector<16x18xf32>
    %116 = arith.addf %113, %115 : vector<16x18xf32>
    %cst_116 = arith.constant 0.000000e+00 : f32
    %117 = vector.broadcast %cst_116 : f32 to vector<16x18xf32>
    %118 = arith.maximumf %116, %117 : vector<16x18xf32>
    %c0_117 = arith.constant 0 : index
    %c0_118 = arith.constant 0 : index
    %c0_119 = arith.constant 0 : index
    %119 = vector.load %arg8[%c0_117, %c0_118, %c0_119] : memref<3x18x54xf32, #tpu.memory_space<vmem>>, vector<1x18x54xf32>
    %120 = vector.shape_cast %119 : vector<1x18x54xf32> to vector<18x54xf32>
    %cst_120 = arith.constant dense<0.000000e+00> : vector<16x54xf32>
    %121 = tpu.matmul %118, %120, %cst_120 {dimension_numbers = #tpu.dot_dimension_numbers<[1], [0], [0], [1], [0, 0, 1, 1], [], []>} : vector<16x18xf32>, vector<18x54xf32>, vector<16x54xf32> -> vector<16x54xf32>
    %c1_121 = arith.constant 1 : index
    %c0_122 = arith.constant 0 : index
    %c0_123 = arith.constant 0 : index
    %122 = vector.load %arg8[%c1_121, %c0_122, %c0_123] : memref<3x18x54xf32, #tpu.memory_space<vmem>>, vector<1x18x54xf32>
    %123 = vector.shape_cast %122 : vector<1x18x54xf32> to vector<18x54xf32>
    %cst_124 = arith.constant dense<0.000000e+00> : vector<16x54xf32>
    %124 = tpu.matmul %118, %123, %cst_124 {dimension_numbers = #tpu.dot_dimension_numbers<[1], [0], [0], [1], [0, 0, 1, 1], [], []>} : vector<16x18xf32>, vector<18x54xf32>, vector<16x54xf32> -> vector<16x54xf32>
    %c2_125 = arith.constant 2 : index
    %c0_126 = arith.constant 0 : index
    %c0_127 = arith.constant 0 : index
    %125 = vector.load %arg8[%c2_125, %c0_126, %c0_127] : memref<3x18x54xf32, #tpu.memory_space<vmem>>, vector<1x18x54xf32>
    %126 = vector.shape_cast %125 : vector<1x18x54xf32> to vector<18x54xf32>
    %cst_128 = arith.constant dense<0.000000e+00> : vector<16x54xf32>
    %127 = tpu.matmul %118, %126, %cst_128 {dimension_numbers = #tpu.dot_dimension_numbers<[1], [0], [0], [1], [0, 0, 1, 1], [], []>} : vector<16x18xf32>, vector<18x54xf32>, vector<16x54xf32> -> vector<16x54xf32>
    %128 = tpu.concatenate %121, %124, %127 in 0 : vector<16x54xf32>, vector<16x54xf32>, vector<16x54xf32> -> vector<48x54xf32>
    %c144 = arith.constant 144 : index
    %c0_129 = arith.constant 0 : index
    %129 = vector.load %arg10[%c144, %c0_129] : memref<180x96xf32, #tpu.memory_space<vmem>>, vector<32x48xf32>
    %cst_130 = arith.constant dense<0.000000e+00> : vector<32x54xf32>
    %130 = tpu.matmul %129, %128, %cst_130 {dimension_numbers = #tpu.dot_dimension_numbers<[1], [0], [0], [1], [0, 0, 1, 1], [], []>} : vector<32x48xf32>, vector<48x54xf32>, vector<32x54xf32> -> vector<32x54xf32>
    %c144_131 = arith.constant 144 : index
    %c0_132 = arith.constant 0 : index
    %131 = vector.load %arg11[%c144_131, %c0_132] : memref<180x1xf32, #tpu.memory_space<vmem>>, vector<32x1xf32>
    %132 = vector.broadcast %131 : vector<32x1xf32> to vector<32x54xf32>
    %133 = arith.addf %130, %132 : vector<32x54xf32>
    %cst_133 = arith.constant 0.000000e+00 : f32
    %134 = vector.broadcast %cst_133 : f32 to vector<32x54xf32>
    %135 = arith.maximumf %133, %134 : vector<32x54xf32>
    %c0_134 = arith.constant 0 : index
    %c0_135 = arith.constant 0 : index
    %c0_136 = arith.constant 0 : index
    %136 = vector.load %arg9[%c0_134, %c0_135, %c0_136] : memref<3x54x200xf32, #tpu.memory_space<vmem>>, vector<1x54x200xf32>
    %137 = vector.shape_cast %136 : vector<1x54x200xf32> to vector<54x200xf32>
    %cst_137 = arith.constant dense<0.000000e+00> : vector<32x200xf32>
    %138 = tpu.matmul %135, %137, %cst_137 {dimension_numbers = #tpu.dot_dimension_numbers<[1], [0], [0], [1], [0, 0, 1, 1], [], []>} : vector<32x54xf32>, vector<54x200xf32>, vector<32x200xf32> -> vector<32x200xf32>
    %c1_138 = arith.constant 1 : index
    %c0_139 = arith.constant 0 : index
    %c0_140 = arith.constant 0 : index
    %139 = vector.load %arg9[%c1_138, %c0_139, %c0_140] : memref<3x54x200xf32, #tpu.memory_space<vmem>>, vector<1x54x200xf32>
    %140 = vector.shape_cast %139 : vector<1x54x200xf32> to vector<54x200xf32>
    %cst_141 = arith.constant dense<0.000000e+00> : vector<32x200xf32>
    %141 = tpu.matmul %135, %140, %cst_141 {dimension_numbers = #tpu.dot_dimension_numbers<[1], [0], [0], [1], [0, 0, 1, 1], [], []>} : vector<32x54xf32>, vector<54x200xf32>, vector<32x200xf32> -> vector<32x200xf32>
    %c2_142 = arith.constant 2 : index
    %c0_143 = arith.constant 0 : index
    %c0_144 = arith.constant 0 : index
    %142 = vector.load %arg9[%c2_142, %c0_143, %c0_144] : memref<3x54x200xf32, #tpu.memory_space<vmem>>, vector<1x54x200xf32>
    %143 = vector.shape_cast %142 : vector<1x54x200xf32> to vector<54x200xf32>
    %cst_145 = arith.constant dense<0.000000e+00> : vector<32x200xf32>
    %144 = tpu.matmul %135, %143, %cst_145 {dimension_numbers = #tpu.dot_dimension_numbers<[1], [0], [0], [1], [0, 0, 1, 1], [], []>} : vector<32x54xf32>, vector<54x200xf32>, vector<32x200xf32> -> vector<32x200xf32>
    %145 = tpu.concatenate %138, %141, %144 in 0 : vector<32x200xf32>, vector<32x200xf32>, vector<32x200xf32> -> vector<96x200xf32>
    %c176 = arith.constant 176 : index
    %c0_146 = arith.constant 0 : index
    %146 = vector.load %arg10[%c176, %c0_146] : memref<180x96xf32, #tpu.memory_space<vmem>>, vector<4x96xf32>
    %cst_147 = arith.constant dense<0.000000e+00> : vector<4x200xf32>
    %147 = tpu.matmul %146, %145, %cst_147 {dimension_numbers = #tpu.dot_dimension_numbers<[1], [0], [0], [1], [0, 0, 1, 1], [], []>} : vector<4x96xf32>, vector<96x200xf32>, vector<4x200xf32> -> vector<4x200xf32>
    %c176_148 = arith.constant 176 : index
    %c0_149 = arith.constant 0 : index
    %148 = vector.load %arg11[%c176_148, %c0_149] : memref<180x1xf32, #tpu.memory_space<vmem>>, vector<4x1xf32>
    %149 = vector.broadcast %148 : vector<4x1xf32> to vector<4x200xf32>
    %150 = arith.addf %147, %149 : vector<4x200xf32>
    %151 = arith.negf %150 : vector<4x200xf32>
    %152 = math.exp %151 : vector<4x200xf32>
    %cst_150 = arith.constant 1.000000e+00 : f32
    %153 = vector.broadcast %cst_150 : f32 to vector<4x200xf32>
    %154 = arith.addf %153, %152 : vector<4x200xf32>
    %155 = arith.divf %153, %154 : vector<4x200xf32>
    %c0_151 = arith.constant 0 : index
    %c0_152 = arith.constant 0 : index
    %c0_153 = arith.constant 0 : index
    %156 = vector.load %arg12[%c0_151, %c0_152, %c0_153] : memref<1x4x200xf32, #tpu.memory_space<vmem>>, vector<1x4x200xf32>
    %157 = vector.shape_cast %156 : vector<1x4x200xf32> to vector<4x200xf32>
    %158 = vector.shape_cast %155 : vector<4x200xf32> to vector<1x4x200xf32>
    tpu.vector_store %arg12[%c0_151, %c0_152, %c0_153], %158 {strides = array<i32>} : memref<1x4x200xf32, #tpu.memory_space<vmem>>, vector<1x4x200xf32>,
    return
  }
  func.func @transform_0(%arg0: i32) -> (i32, i32, i32) {
    %c0_i32 = arith.constant 0 : i32
    %c0_i32_0 = arith.constant 0 : i32
    %c0_i32_1 = arith.constant 0 : i32
    return %arg0, %c0_i32, %c0_i32_0 : i32, i32, i32
  }
  func.func @transform_1(%arg0: i32) -> (i32, i32, i32) {
    %c0_i32 = arith.constant 0 : i32
    %c0_i32_0 = arith.constant 0 : i32
    %c0_i32_1 = arith.constant 0 : i32
    %c0_i32_2 = arith.constant 0 : i32
    return %c0_i32, %c0_i32_0, %c0_i32_1 : i32, i32, i32
  }
  func.func @transform_2(%arg0: i32) -> (i32, i32, i32) {
    %c0_i32 = arith.constant 0 : i32
    %c0_i32_0 = arith.constant 0 : i32
    %c0_i32_1 = arith.constant 0 : i32
    %c0_i32_2 = arith.constant 0 : i32
    return %c0_i32, %c0_i32_0, %c0_i32_1 : i32, i32, i32
  }
  func.func @transform_3(%arg0: i32) -> (i32, i32, i32) {
    %c0_i32 = arith.constant 0 : i32
    %c0_i32_0 = arith.constant 0 : i32
    %c0_i32_1 = arith.constant 0 : i32
    %c0_i32_2 = arith.constant 0 : i32
    return %c0_i32, %c0_i32_0, %c0_i32_1 : i32, i32, i32
  }
  func.func @transform_4(%arg0: i32) -> (i32, i32, i32) {
    %c0_i32 = arith.constant 0 : i32
    %c0_i32_0 = arith.constant 0 : i32
    %c0_i32_1 = arith.constant 0 : i32
    %c0_i32_2 = arith.constant 0 : i32
    return %c0_i32, %c0_i32_0, %c0_i32_1 : i32, i32, i32
  }
  func.func @transform_5(%arg0: i32) -> (i32, i32, i32) {
    %c0_i32 = arith.constant 0 : i32
    %c0_i32_0 = arith.constant 0 : i32
    %c0_i32_1 = arith.constant 0 : i32
    %c0_i32_2 = arith.constant 0 : i32
    return %c0_i32, %c0_i32_0, %c0_i32_1 : i32, i32, i32
  }
  func.func @transform_6(%arg0: i32) -> (i32, i32, i32) {
    %c0_i32 = arith.constant 0 : i32
    %c0_i32_0 = arith.constant 0 : i32
    %c0_i32_1 = arith.constant 0 : i32
    %c0_i32_2 = arith.constant 0 : i32
    return %c0_i32, %c0_i32_0, %c0_i32_1 : i32, i32, i32
  }
  func.func @transform_7(%arg0: i32) -> (i32, i32, i32) {
    %c0_i32 = arith.constant 0 : i32
    %c0_i32_0 = arith.constant 0 : i32
    %c0_i32_1 = arith.constant 0 : i32
    %c0_i32_2 = arith.constant 0 : i32
    return %c0_i32, %c0_i32_0, %c0_i32_1 : i32, i32, i32
  }
  func.func @transform_8(%arg0: i32) -> (i32, i32, i32) {
    %c0_i32 = arith.constant 0 : i32
    %c0_i32_0 = arith.constant 0 : i32
    %c0_i32_1 = arith.constant 0 : i32
    %c0_i32_2 = arith.constant 0 : i32
    return %c0_i32, %c0_i32_0, %c0_i32_1 : i32, i32, i32
  }
  func.func @transform_9(%arg0: i32) -> (i32, i32) {
    %c0_i32 = arith.constant 0 : i32
    %c0_i32_0 = arith.constant 0 : i32
    %c0_i32_1 = arith.constant 0 : i32
    return %c0_i32, %c0_i32_0 : i32, i32
  }
  func.func @transform_10(%arg0: i32) -> (i32, i32) {
    %c0_i32 = arith.constant 0 : i32
    %c0_i32_0 = arith.constant 0 : i32
    %c0_i32_1 = arith.constant 0 : i32
    return %c0_i32, %c0_i32_0 : i32, i32
  }
  func.func @transform_11(%arg0: i32) -> (i32, i32, i32) {
    %c0_i32 = arith.constant 0 : i32
    %c0_i32_0 = arith.constant 0 : i32
    %c0_i32_1 = arith.constant 0 : i32
    return %arg0, %c0_i32, %c0_i32_0 : i32, i32, i32
  }
  func.func @transform_12(%arg0: i32) -> (i32, i32, i32) {
    %c0_i32 = arith.constant 0 : i32
    %c0_i32_0 = arith.constant 0 : i32
    %c0_i32_1 = arith.constant 0 : i32
    return %arg0, %c0_i32, %c0_i32_0 : i32, i32, i32
  }
}

</mosaic_0001>

<bundles_post_ra>
// kernel: cae_forward.1
= control target key start
LH: loop header
LB: loop body
LE: loop exit
PB: predicated region body
PF: predicated region fallthrough
CT: control target
= control target key end

     0   :  { %vm71_vm0 = vcmask 588800   ;;  %vm555_vm1 = vcmask 1043456   ;;  %vm587_vm2 = vcmask 228352   ;;  %vm644_vm3 = vcmask 523264   ;;  %s3542_s1 = inlined_call_operand.vmem [shape: f32[7,200,64], index: 1, kind: input, shape index: {}]   ;;  %s3543_s0 = inlined_call_operand.vmem [shape: f32[1,4,200], index: 0, kind: input, shape index: {}]   ;;  %s3544_s10 = inlined_call_operand.vmem [shape: f32[180,1], index: 10, kind: input, shape index: {}]   ;;  %s3545_s9 = inlined_call_operand.vmem [shape: f32[180,96], index: 9, kind: input, shape index: {}]   ;;  %s3546_s2 = inlined_call_operand.vmem [shape: f32[3,64,30], index: 2, kind: input, shape index: {}]   ;;  %s3547_s3 = inlined_call_operand.vmem [shape: f32[3,30,14], index: 3, kind: input, shape index: {}]   ;;  %s3548_s4 = inlined_call_operand.vmem [shape: f32[3,14,6], index: 4, kind: input, shape index: {}]   ;;  %s3549_s5 = inlined_call_operand.vmem [shape: f32[3,6,6], index: 5, kind: input, shape index: {}]   ;;  %s3550_s12 = inlined_call_operand.vmem [shape: f32[1,32,6], index: 12, kind: output, shape index: {1}]   ;;  %s3551_s6 = inlined_call_operand.vmem [shape: f32[3,6,18], index: 6, kind: input, shape index: {}]   ;;  %s3552_s7 = inlined_call_operand.vmem [shape: f32[3,18,54], index: 7, kind: input, shape index: {}]   ;;  %s3553_s8 = inlined_call_operand.vmem [shape: f32[3,54,200], index: 8, kind: input, shape index: {}]   ;;  %s3554_s11 = inlined_call_operand.vmem [shape: f32[1,4,200], index: 11, kind: output, shape index: {0}]  }
   0x1   :  { %v65_v0 = vld [vmem:[%s3542_s1 + $0xc0] sm:$0xff]  ;;  %v56_v1 = vld [vmem:[%s3542_s1 + $0x78] sm:$0xff]  ;;  %v55_v4 = vld [vmem:[%s3542_s1 + $0x70] sm:$0xff]  ;;  %vm776_vm4 = vcmask 785408   ;;  %vm819_vm5 = vcmask 1045504   ;;  %vm812_vm6 = vcmask 244736  }
   0x2   :  { %v2008_v2 = vld [vmem:[%s3542_s1 + $0x140] sm:$0xff]  ;;  %101 = vmatpush.msra.mxu1 %v65_v0  ;;  %74 = vmatpush.msra.mxu0 %v56_v1  ;;  %v64_v3 = vld [vmem:[%s3542_s1 + $0xb8] sm:$0xff]  ;;  %v63_v6 = vld [vmem:[%s3542_s1 + $0xb0] sm:$0xff]  ;;  %vm922_vm7 = vcmask 392192   ;;  %vm956_vm8 = vcmask 113664   ;;  %vm1120_vm9 = vcmask 48128  }
   0x3   :  { %v2007_v5 = vld [vmem:[%s3542_s1 + $0x138] sm:$0xff]  ;;  %146 = vmatpush.msra.mxu2 %v2008_v2  ;;  %v54_v7 = vld [vmem:[%s3542_s1 + $0x68] sm:$0xff]  ;;  %v2006_v8 = vld [vmem:[%s3542_s1 + $0x130] sm:$0xff]  ;;  %vm1479_vm10 = vcmask 1041408   ;;  %vm1472_vm11 = vcmask 146432   ;;  %vm1653_vm12 = vcmask 441344  }
   0x4   :  { %102 = vmatpush.msra.mxu1 %v64_v3  ;;  %75 = vmatpush.msra.mxu0 %v55_v4  ;;  %v62_v9 = vld [vmem:[%s3542_s1 + $0xa8] sm:$0xff]  ;;  %v53_v10 = vld [vmem:[%s3542_s1 + $0x60] sm:$0xff]  ;;  %v52_v15 = vld [vmem:[%s3542_s1 + $0x58] sm:$0xff] }
   0x5   :  { %147 = vmatpush.msra.mxu2 %v2007_v5  ;;  %v2017_v11 = vld [vmem:[%s3542_s1 + $0x188] sm:$0xff]  ;;  %v2016_v13 = vld [vmem:[%s3542_s1 + $0x180] sm:$0xff]  ;;  %v2015_v17 = vld [vmem:[%s3542_s1 + $0x178] sm:$0xff] }
   0x6   :  { %103 = vmatpush.msra.mxu1 %v63_v6  ;;  %76 = vmatpush.msra.mxu0 %v54_v7  ;;  %v2005_v12 = vld [vmem:[%s3542_s1 + $0x128] sm:$0xff]  ;;  %v61_v14 = vld [vmem:[%s3542_s1 + $0xa0] sm:$0xff]  ;;  %v60_v18 = vld [vmem:[%s3542_s1 + $0x98] sm:$0xff] }
   0x7   :  { %148 = vmatpush.msra.mxu2 %v2006_v8  ;;  %173 = vmatpush.msra.mxu3 %v2017_v11  ;;  %v2004_v16 = vld [vmem:[%s3542_s1 + $0x120] sm:$0xff]  ;;  %v51_v19 = vld [vmem:[%s3542_s1 + $0x50] sm:$0xff]  ;;  %v2003_v20 = vld [vmem:[%s3542_s1 + $0x118] sm:$0xff] }
   0x8   :  { %104 = vmatpush.msra.mxu1 %v62_v9  ;;  %77 = vmatpush.msra.mxu0 %v53_v10  ;;  %v2014_v21 = vld [vmem:[%s3542_s1 + $0x170] sm:$0xff]  ;;  %v50_v23 = vld [vmem:[%s3542_s1 + $0x48] sm:$0xff]  ;;  %v49_v27 = vld [vmem:[%s3542_s1 + $0x40] sm:$0xff] }
   0x9   :  { %149 = vmatpush.msra.mxu2 %v2005_v12  ;;  %174 = vmatpush.msra.mxu3 %v2016_v13  ;;  %v59_v22 = vld [vmem:[%s3542_s1 + $0x90] sm:$0xff]  ;;  %v2013_v25 = vld [vmem:[%s3542_s1 + $0x168] sm:$0xff]  ;;  %v2012_v29 = vld [vmem:[%s3542_s1 + $0x160] sm:$0xff] }
   0xa   :  { %105 = vmatpush.msra.mxu1 %v61_v14  ;;  %78 = vmatpush.msra.mxu0 %v52_v15  ;;  %v2002_v24 = vld [vmem:[%s3542_s1 + $0x110] sm:$0xff]  ;;  %v58_v26 = vld [vmem:[%s3542_s1 + $0x88] sm:$0xff]  ;;  %v57_v30 = vld [vmem:[%s3542_s1 + $0x80] sm:$0xff] }
   0xb   :  { %150 = vmatpush.msra.mxu2 %v2004_v16  ;;  %175 = vmatpush.msra.mxu3 %v2015_v17  ;;  %v2001_v28 = vld [vmem:[%s3542_s1 + $0x108] sm:$0xff]  ;;  %v48_v31 = vld [vmem:[%s3542_s1 + $0x38] sm:$0xff]  ;;  %v2000_v32 = vld [vmem:[%s3542_s1 + $0x100] sm:$0xff] }
   0xc   :  { %106 = vmatpush.msra.mxu1 %v60_v18  ;;  %79 = vmatpush.msra.mxu0 %v51_v19  ;;  %v2034_v33 = vld [vmem:[%s3542_s1 + $0x208] sm:$0xff]  ;;  %v47_v34 = vld [vmem:[%s3542_s1 + $0x30] sm:$0xff]  ;;  %v2011_v35 = vld [vmem:[%s3542_s1 + $0x158] sm:$0xff] }
   0xd   :  { %151 = vmatpush.msra.mxu2 %v2003_v20  ;;  %176 = vmatpush.msra.mxu3 %v2014_v21  ;;  %v1999_v36 = vld [vmem:[%s3542_s1 + $0xf8] sm:$0xff]  ;;  %v2033_v37 = vld [vmem:[%s3542_s1 + $0x200] sm:$0xff]  ;;  %v46_v38 = vld [vmem:[%s3542_s1 + $0x28] sm:$0xff] }
   0xe   :  { %107 = vmatpush.msra.mxu1 %v59_v22  ;;  %80 = vmatpush.msra.mxu0 %v50_v23  ;;  %v2010_v39 = vld [vmem:[%s3542_s1 + $0x150] sm:$0xff]  ;;  %v2032_v41 = vld [vmem:[%s3542_s1 + $0x1f8] sm:$0xff]  ;;  %v45_v42 = vld [vmem:[%s3542_s1 + $0x20] sm:$0xff] }
   0xf   :  { %152 = vmatpush.msra.mxu2 %v2002_v24  ;;  %177 = vmatpush.msra.mxu3 %v2013_v25  ;;  %v1998_v40 = vld [vmem:[%s3542_s1 + $0xf0] sm:$0xff]  ;;  %v2009_v43 = vld [vmem:[%s3542_s1 + $0x148] sm:$0xff]  ;;  %v44_v46 = vld [vmem:[%s3542_s1 + $0x18] sm:$0xff] }
  0x10   :  { %108 = vmatpush.msra.mxu1 %v58_v26  ;;  %81 = vmatpush.msra.mxu0 %v49_v27  ;;  %v1997_v44 = vld [vmem:[%s3542_s1 + $0xe8] sm:$0xff]  ;;  %v2031_v45 = vld [vmem:[%s3542_s1 + $0x1f0] sm:$0xff]  ;;  %v1996_v48 = vld [vmem:[%s3542_s1 + $0xe0] sm:$0xff] }
  0x11   :  { %153 = vmatpush.msra.mxu2 %v2001_v28  ;;  %178 = vmatpush.msra.mxu3 %v2012_v29  ;;  %v2043_v47 = vld [vmem:[%s3542_s1 + $0x250] sm:$0xff]  ;;  %v2030_v49 = vld [vmem:[%s3542_s1 + $0x1e8] sm:$0xff]  ;;  %v1995_v52 = vld [vmem:[%s3542_s1 + $0xd8] sm:$0xff] }
  0x12   :  { %109 = vmatpush.msra.mxu1 %v57_v30  ;;  %82 = vmatpush.msra.mxu0 %v48_v31  ;;  %v43_v50 = vld [vmem:[%s3542_s1 + $0x10] sm:$0xff]  ;;  %v2042_v51 = vld [vmem:[%s3542_s1 + $0x248] sm:$0xff]  ;;  %v2029_v53 = vld [vmem:[%s3542_s1 + $0x1e0] sm:$0xff] }
  0x13   :  { %154 = vmatpush.msra.mxu2 %v2000_v32  ;;  %179 = vmatpush.msra.mxu3 %v2011_v35  ;;  %v42_v54 = vld [vmem:[%s3542_s1 + $0x8] sm:$0xff]  ;;  %v2041_v55 = vld [vmem:[%s3542_s1 + $0x240] sm:$0xff]  ;;  %v1994_v57 = vld [vmem:[%s3542_s1 + $0xd0] sm:$0xff] }
  0x14   :  { %218 = vmatpush.msrb.mxu1 %v2034_v33  ;;  %83 = vmatpush.msra.mxu0 %v47_v34  ;;  %v2590_v56 = vld [vmem:[%s3543_s0] sm:$0xff]  ;;  %v2028_v58 = vld [vmem:[%s3542_s1 + $0x1d8] sm:$0xff]  ;;  %v1993_v61 = vld [vmem:[%s3542_s1 + $0xc8] sm:$0xff] }
  0x15   :  { %155 = vmatpush.msra.mxu2 %v1999_v36  ;;  %180 = vmatpush.msra.mxu3 %v2010_v39  ;;  %67 = vst [vmem:[#allocation1] ss:$2 sm:$0xff] %v2590_v56  ;;  %v41_v59 = vld [vmem:[%s3542_s1] sm:$0xff]  ;;  %v2040_v60 = vld [vmem:[%s3542_s1 + $0x238] sm:$0xff]  ;;  %v2027_v62 = vld [vmem:[%s3542_s1 + $0x1d0] sm:$0xff] }
  0x16   :  { %219 = vmatpush.msrb.mxu1 %v2033_v37  ;;  %84 = vmatpush.msra.mxu0 %v46_v38  ;;  %v2060_v63 = vld [vmem:[%s3542_s1 + $0x2d0] sm:$0xff]  ;;  %v2069_v0 = vld [vmem:[%s3542_s1 + $0x318] sm:$0xff]  ;;  %v2026_v1 = vld [vmem:[%s3542_s1 + $0x1c8] sm:$0xff] }
  0x17   :  { %156 = vmatpush.msra.mxu2 %v1998_v40  ;;  %181 = vmatpush.msra.mxu3 %v2009_v43  ;;  %v2039_v2 = vld [vmem:[%s3542_s1 + $0x230] sm:$0xff]  ;;  %v2059_v3 = vld [vmem:[%s3542_s1 + $0x2c8] sm:$0xff]  ;;  %v2025_v5 = vld [vmem:[%s3542_s1 + $0x1c0] sm:$0xff] }
  0x18   :  { %220 = vmatpush.msrb.mxu1 %v2032_v41  ;;  %85 = vmatpush.msra.mxu0 %v45_v42  ;;  %v2068_v4 = vld [vmem:[%s3542_s1 + $0x310] sm:$0xff]  ;;  %v2038_v6 = vld [vmem:[%s3542_s1 + $0x228] sm:$0xff]  ;;  %v2058_v7 = vld [vmem:[%s3542_s1 + $0x2c0] sm:$0xff] }
  0x19   :  { %157 = vmatpush.msra.mxu2 %v1997_v44  ;;  %245 = vmatpush.msrb.mxu3 %v2043_v47  ;;  %v2067_v8 = vld [vmem:[%s3542_s1 + $0x308] sm:$0xff]  ;;  %v2024_v11 = vld [vmem:[%s3542_s1 + $0x1b8] sm:$0xff]  ;;  %v2037_v12 = vld [vmem:[%s3542_s1 + $0x220] sm:$0xff] }
  0x1a   :  { %221 = vmatpush.msrb.mxu1 %v2031_v45  ;;  %86 = vmatpush.msra.mxu0 %v44_v46  ;;  %v2057_v13 = vld [vmem:[%s3542_s1 + $0x2b8] sm:$0xff]  ;;  %v2066_v14 = vld [vmem:[%s3542_s1 + $0x300] sm:$0xff]  ;;  %v2023_v15 = vld [vmem:[%s3542_s1 + $0x1b0] sm:$0xff] }
  0x1b   :  { %158 = vmatpush.msra.mxu2 %v1996_v48  ;;  %246 = vmatpush.msrb.mxu3 %v2042_v51  ;;  %v2036_v16 = vld [vmem:[%s3542_s1 + $0x218] sm:$0xff]  ;;  %v2056_v17 = vld [vmem:[%s3542_s1 + $0x2b0] sm:$0xff]  ;;  %v2022_v19 = vld [vmem:[%s3542_s1 + $0x1a8] sm:$0xff] }
  0x1c   :  { %222 = vmatpush.msrb.mxu1 %v2030_v49  ;;  %87 = vmatpush.msra.mxu0 %v43_v50  ;;  %v2641_v9 = vld.sshfl [vmem:[#allocation1] sm:$0xff pattern:$0x75316420]  ;;  %v2643_v10 = vld.sshfl [vmem:[#allocation1 + $0x8] sm:$0xff pattern:$0x75316420] }
  0x1d   :  { %159 = vmatpush.msra.mxu2 %v1995_v52  ;;  %247 = vmatpush.msrb.mxu3 %v2041_v55  ;;  %140 = vst [vmem:[#allocation1] ss:$2 sm:$0xff] %v2590_v56  ;;  %v2065_v18 = vld [vmem:[%s3542_s1 + $0x2f8] sm:$0xff]  ;;  %v2035_v20 = vld [vmem:[%s3542_s1 + $0x210] sm:$0xff]  ;;  %v2055_v21 = vld [vmem:[%s3542_s1 + $0x2a8] sm:$0xff] }
  0x1e   :  { %223 = vmatpush.msrb.mxu1 %v2029_v53  ;;  %88 = vmatpush.msra.mxu0 %v42_v54  ;;  %v2064_v22 = vld [vmem:[%s3542_s1 + $0x2f0] sm:$0xff]  ;;  %v2086_v23 = vld [vmem:[%s3542_s1 + $0x398] sm:$0xff]  ;;  %v2021_v24 = vld [vmem:[%s3542_s1 + $0x1a0] sm:$0xff] }
  0x1f   :  { %160 = vmatpush.msra.mxu2 %v1994_v57  ;;  %248 = vmatpush.msrb.mxu3 %v2040_v60  ;;  %v2054_v27 = vld [vmem:[%s3542_s1 + $0x2a0] sm:$0xff]  ;;  %v2063_v28 = vld [vmem:[%s3542_s1 + $0x2e8] sm:$0xff]  ;;  %v2085_v29 = vld [vmem:[%s3542_s1 + $0x390] sm:$0xff] }
  0x20   :  { %224 = vmatpush.msrb.mxu1 %v2028_v58  ;;  %89 = vmatpush.msra.mxu0 %v41_v59  ;;  %v2020_v30 = vld [vmem:[%s3542_s1 + $0x198] sm:$0xff]  ;;  %v2062_v32 = vld [vmem:[%s3542_s1 + $0x2e0] sm:$0xff]  ;;  %v2084_v33 = vld [vmem:[%s3542_s1 + $0x388] sm:$0xff] }
  0x21   :  { %161 = vmatpush.msra.mxu2 %v1993_v61  ;;  %249 = vmatpush.msrb.mxu3 %v2039_v2  ;;  %v2053_v31 = vld [vmem:[%s3542_s1 + $0x298] sm:$0xff]  ;;  %v2019_v34 = vld [vmem:[%s3542_s1 + $0x190] sm:$0xff]  ;;  %v2083_v37 = vld [vmem:[%s3542_s1 + $0x380] sm:$0xff] }
  0x22   :  { %225 = vmatpush.msrb.mxu1 %v2027_v62  ;;  %290 = vmatpush.msrb.mxu0 %v2060_v63  ;;  %v2052_v35 = vld [vmem:[%s3542_s1 + $0x290] sm:$0xff]  ;;  %v2061_v36 = vld [vmem:[%s3542_s1 + $0x2d8] sm:$0xff]  ;;  %v2095_v38 = vld [vmem:[%s3542_s1 + $0x3e0] sm:$0xff] }
  0x23   :  { %317 = vmatpush.msrb.mxu2 %v2069_v0  ;;  %250 = vmatpush.msrb.mxu3 %v2038_v6  ;;  %v2112_v39 = vld [vmem:[%s3542_s1 + $0x460] sm:$0xff]  ;;  %v2051_v40 = vld [vmem:[%s3542_s1 + $0x288] sm:$0xff]  ;;  %v2082_v43 = vld [vmem:[%s3542_s1 + $0x378] sm:$0xff] }
  0x24   :  { %226 = vmatpush.msrb.mxu1 %v2026_v1  ;;  %291 = vmatpush.msrb.mxu0 %v2059_v3  ;;  %v141_v25 = vld.sshfl [vmem:[#allocation1] sm:$0xff pattern:$0x75316420]  ;;  %v142_v26 = vld.sshfl [vmem:[#allocation1 + $0x8] sm:$0xff pattern:$0x75316420] }
  0x25   :  { %318 = vmatpush.msrb.mxu2 %v2068_v4  ;;  %251 = vmatpush.msrb.mxu3 %v2037_v12  ;;  %212 = vst [vmem:[#allocation1] ss:$2 sm:$0xff] %v2590_v56  ;;  %v2094_v44 = vld [vmem:[%s3542_s1 + $0x3d8] sm:$0xff]  ;;  %v2050_v46 = vld [vmem:[%s3542_s1 + $0x280] sm:$0xff]  ;;  %v2081_v47 = vld [vmem:[%s3542_s1 + $0x370] sm:$0xff] }
  0x26   :  { %227 = vmatpush.msrb.mxu1 %v2025_v5  ;;  %292 = vmatpush.msrb.mxu0 %v2058_v7  ;;  %v2111_v45 = vld [vmem:[%s3542_s1 + $0x458] sm:$0xff]  ;;  %v2093_v48 = vld [vmem:[%s3542_s1 + $0x3d0] sm:$0xff]  ;;  %v2080_v51 = vld [vmem:[%s3542_s1 + $0x368] sm:$0xff] }
  0x27   :  { %319 = vmatpush.msrb.mxu2 %v2067_v8  ;;  %252 = vmatpush.msrb.mxu3 %v2036_v16  ;;  %v2110_v49 = vld [vmem:[%s3542_s1 + $0x450] sm:$0xff]  ;;  %v2049_v50 = vld [vmem:[%s3542_s1 + $0x278] sm:$0xff]  ;;  %v2092_v52 = vld [vmem:[%s3542_s1 + $0x3c8] sm:$0xff] }
  0x28   :  { %228 = vmatpush.msrb.mxu1 %v2024_v11  ;;  %293 = vmatpush.msrb.mxu0 %v2057_v13  ;;  %v2109_v53 = vld [vmem:[%s3542_s1 + $0x448] sm:$0xff]  ;;  %v2048_v54 = vld [vmem:[%s3542_s1 + $0x270] sm:$0xff]  ;;  %v2079_v55 = vld [vmem:[%s3542_s1 + $0x360] sm:$0xff] }
  0x29   :  { %320 = vmatpush.msrb.mxu2 %v2066_v14  ;;  %253 = vmatpush.msrb.mxu3 %v2035_v20  ;;  %v2091_v57 = vld [vmem:[%s3542_s1 + $0x3c0] sm:$0xff]  ;;  %v2047_v58 = vld [vmem:[%s3542_s1 + $0x268] sm:$0xff]  ;;  %v2078_v62 = vld [vmem:[%s3542_s1 + $0x358] sm:$0xff] }
  0x2a   :  { %229 = vmatpush.msrb.mxu1 %v2023_v15  ;;  %294 = vmatpush.msrb.mxu0 %v2056_v17  ;;  %v2108_v61 = vld [vmem:[%s3542_s1 + $0x440] sm:$0xff]  ;;  %v2090_v63 = vld [vmem:[%s3542_s1 + $0x3b8] sm:$0xff]  ;;  %v2077_v2 = vld [vmem:[%s3542_s1 + $0x350] sm:$0xff] }
  0x2b   :  { %321 = vmatpush.msrb.mxu2 %v2065_v18  ;;  %2018 = vmatmul.msk.f32.vlgmr.msra.gmra.mxu3 %vm71_vm0, %v142_v26  ;;  %v2107_v0 = vld [vmem:[%s3542_s1 + $0x438] sm:$0xff]  ;;  %v2046_v1 = vld [vmem:[%s3542_s1 + $0x260] sm:$0xff]  ;;  %v2089_v3 = vld [vmem:[%s3542_s1 + $0x3b0] sm:$0xff] }
  0x2c   :  { %230 = vmatpush.msrb.mxu1 %v2022_v19  ;;  %162 = vmatmul.f32.vlgmr.msra.gmra.mxu2 %v141_v25  ;;  %v2732_v41 = vld.sshfl [vmem:[#allocation1] sm:$0xff pattern:$0x75316420]  ;;  %v214_v42 = vld.sshfl [vmem:[#allocation1 + $0x8] sm:$0xff pattern:$0x75316420] }
  0x2d   :  { %295 = vmatpush.msrb.mxu0 %v2055_v21  ;;  %322 = vmatpush.msrb.mxu2 %v2064_v22  ;;  %284 = vst [vmem:[#allocation1] ss:$2 sm:$0xff] %v2590_v56  ;;  %v2106_v4 = vld [vmem:[%s3542_s1 + $0x430] sm:$0xff]  ;;  %v2045_v5 = vld [vmem:[%s3542_s1 + $0x258] sm:$0xff]  ;;  %v2076_v6 = vld [vmem:[%s3542_s1 + $0x348] sm:$0xff] }
  0x2e   :  { %362 = vmatpush.msra.mxu3 %v2086_v23  ;;  %231 = vmatpush.msrb.mxu1 %v2021_v24  ;;  %v2088_v7 = vld [vmem:[%s3542_s1 + $0x3a8] sm:$0xff]  ;;  %v2104_v13 = vld [vmem:[%s3542_s1 + $0x420] sm:$0xff]  ;;  %v2074_v15 = vld [vmem:[%s3542_s1 + $0x338] sm:$0xff] }
  0x2f   :  { %296 = vmatpush.msrb.mxu0 %v2054_v27  ;;  %323 = vmatpush.msrb.mxu2 %v2063_v28  ;;  %v2105_v8 = vld [vmem:[%s3542_s1 + $0x428] sm:$0xff]  ;;  %v2103_v16 = vld [vmem:[%s3542_s1 + $0x418] sm:$0xff]  ;;  %v2137_v18 = vld [vmem:[%s3542_s1 + $0x520] sm:$0xff] }
  0x30   :  { %363 = vmatpush.msra.mxu3 %v2085_v29  ;;  %232 = vmatpush.msrb.mxu1 %v2020_v30  ;;  %v2138_v14 = vld [vmem:[%s3542_s1 + $0x528] sm:$0xff]  ;;  %v2073_v19 = vld [vmem:[%s3542_s1 + $0x330] sm:$0xff]  ;;  %v2120_v21 = vld [vmem:[%s3542_s1 + $0x4a0] sm:$0xff] }
  0x31   :  { %297 = vmatpush.msrb.mxu0 %v2053_v31  ;;  %324 = vmatpush.msrb.mxu2 %v2062_v32  ;;  %v2121_v17 = vld [vmem:[%s3542_s1 + $0x4a8] sm:$0xff]  ;;  %v2102_v20 = vld [vmem:[%s3542_s1 + $0x410] sm:$0xff]  ;;  %v2136_v22 = vld [vmem:[%s3542_s1 + $0x518] sm:$0xff] }
  0x32   :  { %364 = vmatpush.msra.mxu3 %v2084_v33  ;;  %233 = vmatpush.msrb.mxu1 %v2019_v34  ;;  %v2072_v23 = vld [vmem:[%s3542_s1 + $0x328] sm:$0xff]  ;;  %v2135_v25 = vld [vmem:[%s3542_s1 + $0x510] sm:$0xff]  ;;  %v2071_v26 = vld [vmem:[%s3542_s1 + $0x320] sm:$0xff] }
  0x33   :  { %90 = vmatmul.f32.vlgmr.msra.gmra.mxu0 %v2641_v9  ;;  %1992 = vmatmul.msk.f32.vlgmr.msra.gmra.mxu1 %vm71_vm0, %v2643_v10  ;;  %v2075_v9 = vld [vmem:[%s3542_s1 + $0x340] sm:$0xff]  ;;  %v2101_v24 = vld [vmem:[%s3542_s1 + $0x408] sm:$0xff]  ;;  %v2119_v27 = vld [vmem:[%s3542_s1 + $0x498] sm:$0xff] }
  0x34   :  { %298 = vmatpush.msrb.mxu0 %v2052_v35  ;;  %325 = vmatpush.msrb.mxu2 %v2061_v36  ;;  %v286_v59 = vld.sshfl [vmem:[#allocation1 + $0x8] sm:$0xff pattern:$0x75316420]  ;;  %v285_v60 = vld.sshfl [vmem:[#allocation1] sm:$0xff pattern:$0x75316420] }
  0x35   :  { %365 = vmatpush.msra.mxu3 %v2083_v37  ;;  %389 = vmatpush.msra.mxu1 %v2095_v38  ;;  %356 = vst [vmem:[#allocation1] ss:$2 sm:$0xff] %v2590_v56  ;;  %v2087_v10 = vld [vmem:[%s3542_s1 + $0x3a0] sm:$0xff]  ;;  %v2147_v31 = vld [vmem:[%s3542_s1 + $0x570] sm:$0xff]  ;;  %v2134_v32 = vld [vmem:[%s3542_s1 + $0x508] sm:$0xff] }
  0x36   :  { %434 = vmatpush.msra.mxu2 %v2112_v39  ;;  %299 = vmatpush.msrb.mxu0 %v2051_v40  ;;  %v2100_v30 = vld [vmem:[%s3542_s1 + $0x400] sm:$0xff]  ;;  %v2118_v33 = vld [vmem:[%s3542_s1 + $0x490] sm:$0xff]  ;;  %v2099_v34 = vld [vmem:[%s3542_s1 + $0x3f8] sm:$0xff] }
  0x37   :  { %366 = vmatpush.msra.mxu3 %v2082_v43  ;;  %390 = vmatpush.msra.mxu1 %v2094_v44  ;;  %v2133_v35 = vld [vmem:[%s3542_s1 + $0x500] sm:$0xff]  ;;  %v2117_v36 = vld [vmem:[%s3542_s1 + $0x488] sm:$0xff]  ;;  %v2098_v37 = vld [vmem:[%s3542_s1 + $0x3f0] sm:$0xff] }
  0x38   :  { %435 = vmatpush.msra.mxu2 %v2111_v45  ;;  %300 = vmatpush.msrb.mxu0 %v2050_v46  ;;  %v2145_v38 = vld [vmem:[%s3542_s1 + $0x560] sm:$0xff]  ;;  %v2132_v39 = vld [vmem:[%s3542_s1 + $0x4f8] sm:$0xff]  ;;  %v2131_v43 = vld [vmem:[%s3542_s1 + $0x4f0] sm:$0xff] }
  0x39   :  { %367 = vmatpush.msra.mxu3 %v2081_v47  ;;  %391 = vmatpush.msra.mxu1 %v2093_v48  ;;  %v2116_v40 = vld [vmem:[%s3542_s1 + $0x480] sm:$0xff]  ;;  %v2115_v44 = vld [vmem:[%s3542_s1 + $0x478] sm:$0xff]  ;;  %v2143_v45 = vld [vmem:[%s3542_s1 + $0x550] sm:$0xff] }
  0x3a   :  { %436 = vmatpush.msra.mxu2 %v2110_v49  ;;  %301 = vmatpush.msrb.mxu0 %v2049_v50  ;;  %v2130_v46 = vld [vmem:[%s3542_s1 + $0x4e8] sm:$0xff]  ;;  %v2114_v47 = vld [vmem:[%s3542_s1 + $0x470] sm:$0xff]  ;;  %v2129_v49 = vld [vmem:[%s3542_s1 + $0x4e0] sm:$0xff] }
  0x3b   :  { %368 = vmatpush.msra.mxu3 %v2080_v51  ;;  %392 = vmatpush.msra.mxu1 %v2092_v52  ;;  %v2142_v48 = vld [vmem:[%s3542_s1 + $0x548] sm:$0xff]  ;;  %v2141_v51 = vld [vmem:[%s3542_s1 + $0x540] sm:$0xff]  ;;  %v2128_v52 = vld [vmem:[%s3542_s1 + $0x4d8] sm:$0xff] }
  0x3c   :  { %437 = vmatpush.msra.mxu2 %v2109_v53  ;;  %302 = vmatpush.msrb.mxu0 %v2048_v54  ;;  %v2828_v11 = vld.sshfl [vmem:[#allocation1] sm:$0xff pattern:$0x75316420]  ;;  %v2830_v12 = vld.sshfl [vmem:[#allocation1 + $0x8] sm:$0xff pattern:$0x75316420] }
  0x3d   :  { %369 = vmatpush.msra.mxu3 %v2079_v55  ;;  %393 = vmatpush.msra.mxu1 %v2091_v57  ;;  %428 = vst [vmem:[#allocation1] ss:$2 sm:$0xff] %v2590_v56  ;;  %v2113_v50 = vld [vmem:[%s3542_s1 + $0x468] sm:$0xff]  ;;  %v2140_v53 = vld [vmem:[%s3542_s1 + $0x538] sm:$0xff]  ;;  %v2127_v54 = vld [vmem:[%s3542_s1 + $0x4d0] sm:$0xff] }
  0x3e   :  { %2070 = vmatmul.msk.f32.vlgmr.msrb.gmra.mxu2 %vm71_vm0, %v286_v59  ;;  %303 = vmatpush.msrb.mxu0 %v2047_v58  ;;  %v2139_v55 = vld [vmem:[%s3542_s1 + $0x530] sm:$0xff]  ;;  %v2126_v57 = vld [vmem:[%s3542_s1 + $0x4c8] sm:$0xff]  ;;  %v2125_v59 = vld [vmem:[%s3542_s1 + $0x4c0] sm:$0xff] }
  0x3f   :  { %438 = vmatpush.msra.mxu2 %v2108_v61  ;;  %370 = vmatpush.msra.mxu3 %v2078_v62  ;;  %v2123_v61 = vld [vmem:[%s3542_s1 + $0x4b0] sm:$0xff] }
  0x40   :  { %394 = vmatpush.msra.mxu1 %v2090_v63  ;;  %2044 = vmatmul.msk.f32.vlgmr.msrb.gmra.mxu3 %vm71_vm0, %v214_v42  ;;  %v2144_v42 = vld [vmem:[%s3542_s1 + $0x558] sm:$0xff]  ;;  %v563_v63 = vld [vmem:[%s3544_s10] sm:$0xff] }
  0x41   :  { %439 = vmatpush.msra.mxu2 %v2107_v0  ;;  %304 = vmatpush.msrb.mxu0 %v2046_v1  ;;  %v2353_v0 = vmov 0   ;;  %v564_v1 = vld [vmem:[%s3544_s10 + $0x8] sm:$0xff] }
  0x42   :  { %371 = vmatpush.msra.mxu3 %v2077_v2  ;;  %395 = vmatpush.msra.mxu1 %v2089_v3  ;;  %v565_v2 = vld [vmem:[%s3544_s10 + $0x10] sm:$0xff] }
  0x43   :  { %440 = vmatpush.msra.mxu2 %v2106_v4  ;;  %305 = vmatpush.msrb.mxu0 %v2045_v5  ;;  %v910_v3 = vld [vmem:[%s3544_s10 + $0x30] sm:$0xff]  ;;  %v566_v4 = vld [vmem:[%s3544_s10 + $0x18] sm:$0xff]  ;;  %v1052_v5 = vld [vmem:[%s3544_s10 + $0x48] sm:$0xff] }
  0x44   :  { %372 = vmatpush.msra.mxu3 %v2076_v6  ;;  %396 = vmatpush.msra.mxu1 %v2088_v7  ;;  %v429_v28 = vld.sshfl [vmem:[#allocation1] sm:$0xff pattern:$0x75316420]  ;;  %v430_v29 = vld.sshfl [vmem:[#allocation1 + $0x8] sm:$0xff pattern:$0x75316420] }
  0x45   :  { %306 = vmatmul.f32.vlgmr.msrb.gmra.mxu0 %v285_v60  ;;  %441 = vmatpush.msra.mxu2 %v2105_v8  ;;  %500 = vst [vmem:[#allocation1] ss:$2 sm:$0xff] %v2590_v56  ;;  %v2146_v56 = vld [vmem:[%s3542_s1 + $0x568] sm:$0xff]  ;;  %v2124_v60 = vld [vmem:[%s3542_s1 + $0x4b8] sm:$0xff]  ;;  %v1242_v7 = vld [vmem:[%s3544_s10 + $0x60] sm:$0xff] }
  0x46   :  { %373 = vmatpush.msra.mxu3 %v2075_v9  ;;  %397 = vmatpush.msra.mxu1 %v2087_v10  ;;  %v911_v6 = vld [vmem:[%s3544_s10 + $0x38] sm:$0xff]  ;;  %v1053_v8 = vld [vmem:[%s3544_s10 + $0x50] sm:$0xff] }
  0x47   :  { %234 = vmatmul.f32.vlgmr.msrb.gmra.mxu1 %v2732_v41  ;;  %442 = vmatpush.msra.mxu2 %v2104_v13  ;;  %v2097_v41 = vld [vmem:[%s3542_s1 + $0x3e8] sm:$0xff]  ;;  %v1245_v9 = vld [vmem:[%s3544_s10 + $0x78] sm:$0xff] }
  0x48   :  { %506 = vmatpush.msrb.mxu1 %v2138_v14  ;;  %374 = vmatpush.msra.mxu3 %v2074_v15  ;;  %v1243_v14 = vld [vmem:[%s3544_s10 + $0x68] sm:$0xff]  ;;  %v1570_v15 = vld [vmem:[%s3544_s10 + $0x90] sm:$0xff] }
  0x49   :  { %443 = vmatpush.msra.mxu2 %v2103_v16  ;;  %461 = vmatpush.msra.mxu0 %v2121_v17 }
  0x4a   :  { %507 = vmatpush.msrb.mxu1 %v2137_v18  ;;  %375 = vmatpush.msra.mxu3 %v2073_v19 }
  0x4b   :  { %444 = vmatpush.msra.mxu2 %v2102_v20  ;;  %462 = vmatpush.msra.mxu0 %v2120_v21  ;;  %v1426_v20 = vld [vmem:[%s3544_s10 + $0x80] sm:$0xff]  ;;  %v1573_v21 = vld [vmem:[%s3544_s10 + $0xa8] sm:$0xff] }
  0x4c   :  { %508 = vmatpush.msrb.mxu1 %v2136_v22  ;;  %376 = vmatpush.msra.mxu3 %v2072_v23  ;;  %v502_v58 = vld.sshfl [vmem:[#allocation1 + $0x8] sm:$0xff pattern:$0x75316420]  ;;  %v501_v62 = vld.sshfl [vmem:[#allocation1] sm:$0xff pattern:$0x75316420] }
  0x4d   :  { %445 = vmatpush.msra.mxu2 %v2101_v24  ;;  %463 = vmatpush.msra.mxu0 %v2119_v27 }
  0x4e   :  { %509 = vmatpush.msrb.mxu1 %v2135_v25  ;;  %377 = vmatpush.msra.mxu3 %v2071_v26  ;;  %v1571_v26 = vld [vmem:[%s3544_s10 + $0x98] sm:$0xff] }
  0x4f   :  { %446 = vmatpush.msra.mxu2 %v2100_v30  ;;  %464 = vmatpush.msra.mxu0 %v2118_v33 }
  0x50   :  { %533 = vmatpush.msrb.mxu3 %v2147_v31  ;;  %510 = vmatpush.msrb.mxu1 %v2134_v32 }
  0x51   :  { %447 = vmatpush.msra.mxu2 %v2099_v34  ;;  %465 = vmatpush.msra.mxu0 %v2117_v36  ;;  %v1889_v36 = vld [vmem:[%s3544_s10 + $0xb0] sm:$0xf] }
  0x52   :  { %534 = vmatpush.msrb.mxu3 %v2146_v56  ;;  %511 = vmatpush.msrb.mxu1 %v2133_v35 }
  0x53   :  { %448 = vmatpush.msra.mxu2 %v2098_v37  ;;  %466 = vmatpush.msra.mxu0 %v2116_v40 }
  0x54   :  { %535 = vmatpush.msrb.mxu3 %v2145_v38  ;;  %512 = vmatpush.msrb.mxu1 %v2132_v39 }
  0x55   :  { %449 = vmatpush.msra.mxu2 %v2097_v41  ;;  %467 = vmatpush.msra.mxu0 %v2115_v44  ;;  %v559_v41 = vld [vmem:[%s3545_s9] sm:$0xff]  ;;  %v561_v44 = vld [vmem:[%s3545_s9 + $0x10] sm:$0xff] }
  0x56   :  { %536 = vmatpush.msrb.mxu3 %v2144_v42  ;;  %513 = vmatpush.msrb.mxu1 %v2131_v43  ;;  %v560_v43 = vld [vmem:[%s3545_s9 + $0x8] sm:$0xff] }
  0x57   :  { %450 = vmatmul.f32.vlgmr.msra.gmra.mxu2 %v429_v28  ;;  %378 = vmatmul.f32.vlgmr.msra.gmra.mxu3 %v2828_v11 }
  0x58   :  { %537 = vmatpush.msrb.mxu3 %v2143_v45  ;;  %514 = vmatpush.msrb.mxu1 %v2130_v46  ;;  %v562_v45 = vld [vmem:[%s3545_s9 + $0x18] sm:$0xff] }
  0x59   :  { %468 = vmatpush.msra.mxu0 %v2114_v47  ;;  %2096 = vmatmul.msk.f32.vlgmr.msra.gmra.mxu1 %vm71_vm0, %v2830_v12  ;;  %v643_v46 = vld [vmem:[%s3546_s2 + $0x38] sm:$0xff] }
  0x5a   :  { %538 = vmatpush.msrb.mxu3 %v2142_v48  ;;  %515 = vmatpush.msrb.mxu1 %v2129_v49  ;;  %v2165_v47 = vld [vmem:[%s3546_s2 + $0x78] sm:$0xff]  ;;  %v642_v49 = vld [vmem:[%s3546_s2 + $0x30] sm:$0xff] }
  0x5b   :  { %469 = vmatpush.msra.mxu0 %v2113_v50  ;;  %2342 = vset.pattern.permute.xlu0 %v2353_v0  ;;  %v2177_v48 = vld [vmem:[%s3546_s2 + $0xb8] sm:$0xff]  ;;  %v2164_v50 = vld [vmem:[%s3546_s2 + $0x70] sm:$0xff] }
  0x5c   :  { %539 = vmatpush.msrb.mxu3 %v2141_v51  ;;  %516 = vmatpush.msrb.mxu1 %v2128_v52  ;;  %v2176_v51 = vld [vmem:[%s3546_s2 + $0xb0] sm:$0xff]  ;;  %v641_v52 = vld [vmem:[%s3546_s2 + $0x28] sm:$0xff] }
  0x5d   :  { %2122 = vmatmul.msk.f32.vlgmr.msra.gmra.mxu0 %vm71_vm0, %v430_v29  ;;  %2343 = vset.pattern.permute.xlu1 %v2353_v0 }
  0x5e   :  { %540 = vmatpush.msrb.mxu3 %v2140_v53  ;;  %517 = vmatpush.msrb.mxu1 %v2127_v54  ;;  %v2163_v53 = vld [vmem:[%s3546_s2 + $0x68] sm:$0xff] }
  0x5f   :  { %569 = vperm.xlu0 %2342, %v563_v63   ;;  %2344 = vset.pattern.permute.xlu2 %v2353_v0  ;;  %v2175_v54 = vld [vmem:[%s3546_s2 + $0xa8] sm:$0xff]  ;;  %v2160_v63 = vld [vmem:[%s3546_s2 + $0x50] sm:$0xff] }
  0x60   :  { %541 = vmatpush.msrb.mxu3 %v2139_v55  ;;  %518 = vmatpush.msrb.mxu1 %v2126_v57  ;;  %v640_v55 = vld [vmem:[%s3546_s2 + $0x20] sm:$0xff]  ;;  %v2172_v0 = vld [vmem:[%s3546_s2 + $0x90] sm:$0xff] }
  0x61   :  { %2148 = vmatmul.msk.f32.vlgmr.msrb.gmra.mxu3 %vm71_vm0, %v502_v58  ;;  %579 = vperm.xlu1 %2343, %v565_v2   ;;  %v2162_v57 = vld [vmem:[%s3546_s2 + $0x60] sm:$0xff]  ;;  %v2159_v2 = vld [vmem:[%s3546_s2 + $0x48] sm:$0xff] }
  0x62   :  { %519 = vmatpush.msrb.mxu1 %v2125_v59  ;;  %665 = vmatpush.msrb.mxu2 %v643_v46  ;;  %v2174_v58 = vld [vmem:[%s3546_s2 + $0xa0] sm:$0xff]  ;;  %v639_v59 = vld [vmem:[%s3546_s2 + $0x18] sm:$0xff] }
  0x63   :  { %703 = vmatpush.msra.mxu3 %v2165_v47  ;;  %v2197_v46 = vld [vmem:[%s3547_s3 + $0x58] sm:$0x3f]  ;;  %v810_v47 = vld [vmem:[%s3547_s3 + $0x10] sm:$0xff] }
  0x64   :  { %520 = vmatpush.msrb.mxu1 %v2124_v60  ;;  %666 = vmatpush.msrb.mxu2 %v642_v49  ;;  %v2161_v60 = vld [vmem:[%s3546_s2 + $0x58] sm:$0xff]  ;;  %v809_v49 = vld [vmem:[%s3547_s3 + $0x8] sm:$0xff] }
  0x65   :  { %704 = vmatpush.msra.mxu3 %v2164_v50  ;;  %v2188_v50 = vld [vmem:[%s3547_s3 + $0x28] sm:$0xff] }
  0x66   :  { %521 = vmatpush.msrb.mxu1 %v2123_v61  ;;  %667 = vmatpush.msrb.mxu2 %v641_v52  ;;  %v2173_v61 = vld [vmem:[%s3546_s2 + $0x98] sm:$0xff]  ;;  %v808_v52 = vld [vmem:[%s3547_s3] sm:$0xff] }
  0x67   :  { %522 = vmatmul.f32.vlgmr.msrb.gmra.mxu1 %v501_v62  ;;  %574 = vperm.xlu0 %2342, %v564_v1   ;;  %v638_v62 = vld [vmem:[%s3546_s2 + $0x10] sm:$0xff]  ;;  %v637_v1 = vld [vmem:[%s3546_s2 + $0x8] sm:$0xff] }
  0x68   :  { %741 = vmatpush.msra.mxu1 %v2177_v48  ;;  %705 = vmatpush.msra.mxu3 %v2163_v53  ;;  %v2196_v48 = vld [vmem:[%s3547_s3 + $0x50] sm:$0xff]  ;;  %v2187_v53 = vld [vmem:[%s3547_s3 + $0x20] sm:$0xff] }
  0x69   :  { %584 = vperm.xlu1 %2343, %v566_v4   ;;  %668 = vmatpush.msrb.mxu2 %v640_v55  ;;  %v636_v4 = vld [vmem:[%s3546_s2] sm:$0xff] }
  0x6a   :  { %742 = vmatpush.msra.mxu1 %v2176_v51  ;;  %706 = vmatpush.msra.mxu3 %v2162_v57  ;;  %v2195_v51 = vld [vmem:[%s3547_s3 + $0x48] sm:$0xff] }
  0x6b   :  { %669 = vmatpush.msrb.mxu2 %v639_v59 }
  0x6c   :  { %743 = vmatpush.msra.mxu1 %v2175_v54  ;;  %707 = vmatpush.msra.mxu3 %v2161_v60  ;;  %v2194_v54 = vld [vmem:[%s3547_s3 + $0x40] sm:$0xff] }
  0x6d   :  { %670 = vmatpush.msrb.mxu2 %v638_v62 }
  0x6e   :  { %744 = vmatpush.msra.mxu1 %v2174_v58  ;;  %708 = vmatpush.msra.mxu3 %v2160_v63 }
  0x6f   :  { %914 = vperm.xlu0 %2342, %v910_v3   ;;  %v2171_v3 = vld [vmem:[%s3546_s2 + $0x88] sm:$0xff]  ;;  %671 = vmatpush.msrb.mxu2 %v637_v1 }
  0x70   :  { %745 = vmatpush.msra.mxu1 %v2173_v61  ;;  %709 = vmatpush.msra.mxu3 %v2159_v2 }
  0x71   :  { %919 = vperm.xlu1 %2343, %v911_v6   ;;  %v2170_v6 = vld [vmem:[%s3546_s2 + $0x80] sm:$0xff]  ;;  %672 = vmatpush.msrb.mxu2 %v636_v4 }
  0x72   :  { %746 = vmatpush.msra.mxu1 %v2172_v0  ;;  %v955_v0 = vld [vmem:[%s3548_s4 + $0x8] sm:$0x3f] }
  0x74   :  { %747 = vmatpush.msra.mxu1 %v2171_v3 }
  0x76   :  { %748 = vmatpush.msra.mxu1 %v2170_v6 }
  0x77   :  { %1062 = vperm.xlu0 %2342, %v1052_v5   ;;  %v2158_v5 = vld [vmem:[%s3546_s2 + $0x40] sm:$0xff] }
  0x78   :  { %710 = vmatpush.msra.mxu3 %v2158_v5  ;;  %2203 = vmatpush.msk.msrb.mxu1 %vm819_vm5, %v955_v0  ;;  %v2246_v0 = vld [vmem:[%s3551_s6 + $0x8] sm:$0x3f] }
  0x79   :  { %1067 = vperm.xlu1 %2343, %v1053_v8  }
  0x7f   :  { %1248 = vperm.xlu0 %2342, %v1242_v7  }
  0x81   :  { %1253 = vperm.xlu1 %2343, %v1243_v14  }
  0x87   :  { %1263 = vperm.xlu0 %2342, %v1245_v9  }
  0x89   :  { %1430 = vperm.xlu1 %2343, %v1426_v20  }
  0x8f   :  { %1576 = vperm.xlu0 %2342, %v1570_v15  }
  0x91   :  { %1581 = vperm.xlu1 %2343, %v1571_v26  }
  0x97   :  { %1591 = vperm.xlu0 %2342, %v1573_v21  }
  0x99   :  { %1892 = vperm.xlu1 %2343, %v1889_v36   ;;  %v1244_v36 = vld [vmem:[%s3544_s10 + $0x70] sm:$0xff] }
  0xae   :  { %v183_v11 = vpop.f32.mrf.mxu3 }
  0xaf   :  { %v163_v12 = vpop.f32.mrf.mxu2 }
  0xb0   :  { %v111_v10 = vpop.f32.mrf.mxu1  ;;  %v91_v13 = vpop.f32.mrf.mxu0  ;;  %v184_v30 = vadd.f32 %v183_v11, %v163_v12 }
  0xb1   :  { %v112_v38 = vadd.f32 %v111_v10, %v91_v13 }
  0xb2   :  { %v547_v37 = vrot.slane %v184_v30, 4 }
  0xb4   :  { %v556_v42 = vsel %vm555_vm1, %v112_v38, %v547_v37  ;;  %v1427_v38 = vld [vmem:[%s3544_s10 + $0x88] sm:$0xff] }
  0xc1   :  { %v327_v19 = vpop.f32.mrf.mxu2 }
  0xc2   :  { %v307_v18 = vpop.f32.mrf.mxu0 }
  0xc3   :  { %v255_v17 = vpop.f32.mrf.mxu3  ;;  %v328_v28 = vadd.f32 %v327_v19, %v307_v18 }
  0xc4   :  { %v235_v16 = vpop.f32.mrf.mxu1 }
  0xc5   :  { %v550_v56 = vrot.slane %v328_v28, 4  ;;  %v256_v35 = vadd.f32 %v255_v17, %v235_v16 }
  0xc7   :  { %v557_v40 = vsel %vm555_vm1, %v256_v35, %v550_v56  ;;  %v1054_v56 = vld [vmem:[%s3544_s10 + $0x58] sm:$0xff] }
  0xd1   :  { %v570_v7 = vpop.permute.xlu0 %569 }
  0xd3   :  { %v580_v15 = vpop.permute.xlu1 %579 }
  0xd6   :  { %v399_v22 = vpop.f32.mrf.mxu1 }
  0xd9   :  { %v575_v11 = vpop.permute.xlu0 %574 }
  0xda   :  { %v379_v23 = vpop.f32.mrf.mxu3  ;;  %v451_v24 = vpop.f32.mrf.mxu2 }
  0xdb   :  { %v471_v25 = vpop.f32.mrf.mxu0  ;;  %v400_v32 = vadd.f32 %v399_v22, %v379_v23  ;;  %v585_v19 = vpop.permute.xlu1 %584 }
  0xdc   :  { %v472_v27 = vadd.f32 %v471_v25, %v451_v24  ;;  %v764_v24 = vld [vmem:[%s3544_s10 + $0x20] sm:$0xff] }
  0xdd   :  { %768 = vperm.xlu2 %2344, %v764_v24  }
  0xde   :  { %v553_v31 = vrot.slane %v472_v27, 4  ;;  %v765_v27 = vld [vmem:[%s3544_s10 + $0x28] sm:$0xff] }
  0xe0   :  { %v558_v39 = vsel %vm555_vm1, %v400_v32, %v553_v31  ;;  %v1051_v31 = vld [vmem:[%s3544_s10 + $0x40] sm:$0xff] }
  0xe4   :  { %v543_v29 = vpop.f32.mrf.mxu3  ;;  %v523_v33 = vpop.f32.mrf.mxu1 }
  0xe5   :  { %v544_v34 = vadd.f32 %v543_v29, %v523_v33  ;;  %773 = vperm.xlu2 %2344, %v765_v27  }
  0xe7   :  { %2149 = vmatpush.msk.msrb.mxu0 %vm555_vm1, %v544_v34 }
  0xe9   :  { %616 = vmatpush.msrb.mxu0 %v558_v39 }
  0xeb   :  { %617 = vmatpush.msrb.mxu0 %v557_v40  ;;  %v762_v40 = vld [vmem:[%s3545_s9 + $0x20] sm:$0xff] }
  0xed   :  { %618 = vmatpush.msrb.mxu0 %v556_v42  ;;  %1057 = vperm.xlu2 %2344, %v1051_v31   ;;  %v763_v42 = vld [vmem:[%s3545_s9 + $0x28] sm:$0xff]  ;;  %v1050_v31 = vld [vmem:[%s3545_s9 + $0x58] sm:$0xff] }
  0xee   :  { %2150 = vmatmul.msk.f32.vlgmr.msrb.gmra.mxu0 %vm587_vm2, %v559_v41  ;;  %v1572_v41 = vld [vmem:[%s3544_s10 + $0xa0] sm:$0xff] }
  0xf5   :  { %1072 = vperm.xlu2 %2344, %v1054_v56  }
  0xf6   :  { %2151 = vmatmul.msk.f32.gmra.mxu0 %vm587_vm2, %v560_v43  ;;  %v2190_v43 = vld [vmem:[%s3547_s3 + $0x38] sm:$0x3f] }
  0xf7   :  { %2191 = vmatpush.msk.msrb.mxu3 %vm819_vm5, %v2190_v43 }
  0xfd   :  { %1258 = vperm.xlu2 %2344, %v1244_v36  }
  0xfe   :  { %2152 = vmatmul.msk.f32.gmra.mxu0 %vm587_vm2, %v561_v44  ;;  %v811_v44 = vld [vmem:[%s3547_s3 + $0x18] sm:$0x3f] }
  0xff   :  { %2184 = vmatpush.msk.msra.mxu2 %vm819_vm5, %v811_v44 }
 0x101   :  { %836 = vmatpush.msra.mxu2 %v810_v47 }
 0x103   :  { %837 = vmatpush.msra.mxu2 %v809_v49 }
 0x105   :  { %1435 = vperm.xlu2 %2344, %v1427_v38   ;;  %838 = vmatpush.msra.mxu2 %v808_v52 }
 0x106   :  { %2153 = vmatmul.msk.f32.gmra.mxu0 %vm587_vm2, %v562_v45  ;;  %v2189_v45 = vld [vmem:[%s3547_s3 + $0x30] sm:$0xff] }
 0x107   :  { %867 = vmatpush.msrb.mxu3 %v2189_v45 }
 0x109   :  { %868 = vmatpush.msrb.mxu3 %v2188_v50 }
 0x10b   :  { %869 = vmatpush.msrb.mxu3 %v2187_v53 }
 0x10d   :  { %1586 = vperm.xlu2 %2344, %v1572_v41  }
 0x137   :  { %v769_v55 = vpop.permute.xlu2 %768 }
 0x13f   :  { %v774_v60 = vpop.permute.xlu2 %773 }
 0x147   :  { %v1058_v56 = vpop.permute.xlu2 %1057 }
 0x16b   :  { %v620_v8 = vpop.f32.mrf.mxu0 }
 0x16c   :  { %v621_v9 = vadd.f32 %v620_v8, %v570_v7  ;;  %v908_v7 = vld [vmem:[%s3545_s9 + $0x30] sm:$0xff]  ;;  %v909_v8 = vld [vmem:[%s3545_s9 + $0x38] sm:$0xff] }
 0x16e   :  { %v632_v10 = vmax.f32 %v621_v9, 0.0  ;;  %v2207_v9 = vld [vmem:[%s3548_s4 + $0x18] sm:$0x3f] }
 0x170   :  { %2154 = vmatmul.msk.f32.vlgmr.msrb.gmra.mxu2 %vm644_vm3, %v632_v10  ;;  %2166 = vmatmul.msk.f32.vlgmr.msra.gmra.mxu3 %vm644_vm3, %v632_v10 }
 0x171   :  { %2178 = vmatmul.msk.f32.vlgmr.msra.gmra.mxu1 %vm644_vm3, %v632_v10  ;;  %v2212_v10 = vld [vmem:[%s3548_s4 + $0x28] sm:$0x3f]  ;;  %2208 = vmatpush.msk.msra.mxu3 %vm819_vm5, %v2207_v9 }
 0x173   :  { %v623_v12 = vpop.f32.mrf.mxu0 }
 0x174   :  { %v624_v13 = vadd.f32 %v623_v12, %v575_v11  ;;  %v954_v11 = vld [vmem:[%s3548_s4] sm:$0xff]  ;;  %v2206_v12 = vld [vmem:[%s3548_s4 + $0x10] sm:$0xff] }
 0x175   :  { %981 = vmatpush.msrb.mxu1 %v954_v11  ;;  %1010 = vmatpush.msra.mxu3 %v2206_v12 }
 0x176   :  { %v633_v14 = vmax.f32 %v624_v13, 0.0  ;;  %v2211_v13 = vld [vmem:[%s3548_s4 + $0x20] sm:$0xff] }
 0x178   :  { %2155 = vmatmul.msk.f32.gmra.mxu2 %vm644_vm3, %v633_v14  ;;  %2167 = vmatmul.msk.f32.gmra.mxu3 %vm644_vm3, %v633_v14 }
 0x179   :  { %2179 = vmatmul.msk.f32.gmra.mxu1 %vm644_vm3, %v633_v14  ;;  %v915_v14 = vpop.permute.xlu0 %914 }
 0x17b   :  { %v626_v16 = vpop.f32.mrf.mxu0 }
 0x17c   :  { %v627_v17 = vadd.f32 %v626_v16, %v580_v15 }
 0x17e   :  { %v634_v18 = vmax.f32 %v627_v17, 0.0 }
 0x180   :  { %2156 = vmatmul.msk.f32.gmra.mxu2 %vm644_vm3, %v634_v18  ;;  %2168 = vmatmul.msk.f32.gmra.mxu3 %vm644_vm3, %v634_v18 }
 0x181   :  { %2180 = vmatmul.msk.f32.gmra.mxu1 %vm644_vm3, %v634_v18  ;;  %v920_v18 = vpop.permute.xlu1 %919  ;;  %v1063_v38 = vpop.permute.xlu0 %1062 }
 0x183   :  { %v629_v20 = vpop.f32.mrf.mxu0 }
 0x184   :  { %v630_v21 = vadd.f32 %v629_v20, %v585_v19 }
 0x186   :  { %v635_v22 = vmax.f32 %v630_v21, 0.0 }
 0x188   :  { %2157 = vmatmul.msk.f32.gmra.mxu2 %vm644_vm3, %v635_v22  ;;  %2169 = vmatmul.msk.f32.gmra.mxu3 %vm644_vm3, %v635_v22 }
 0x189   :  { %2181 = vmatmul.msk.f32.gmra.mxu1 %vm644_vm3, %v635_v22  ;;  %vm1981_vm3 = vcmask 588804  }
 0x1ee   :  { %v750_v23 = vpop.f32.mrf.mxu1 }
 0x1f3   :  { %v712_v25 = vpop.f32.mrf.mxu3  ;;  %v674_v28 = vpop.f32.mrf.mxu2 }
 0x1f6   :  { %v753_v26 = vpop.f32.mrf.mxu1 }
 0x1fb   :  { %v715_v29 = vpop.f32.mrf.mxu3  ;;  %v677_v32 = vpop.f32.mrf.mxu2 }
 0x1fe   :  { %v756_v30 = vpop.f32.mrf.mxu1 }
 0x203   :  { %v718_v33 = vpop.f32.mrf.mxu3  ;;  %v680_v35 = vpop.f32.mrf.mxu2 }
 0x206   :  { %v759_v34 = vpop.f32.mrf.mxu1 }
 0x207   :  { %787 = vmatpush.msra.mxu0 %v759_v34  ;;  %v2231_v34 = vld [vmem:[%s3549_s5 + $0x10] sm:$0x3f] }
 0x209   :  { %788 = vmatpush.msra.mxu0 %v756_v30  ;;  %v1049_v30 = vld [vmem:[%s3545_s9 + $0x50] sm:$0xff] }
 0x20b   :  { %789 = vmatpush.msra.mxu0 %v753_v26  ;;  %v721_v37 = vpop.f32.mrf.mxu3  ;;  %v683_v39 = vpop.f32.mrf.mxu2 }
 0x20d   :  { %790 = vmatpush.msra.mxu0 %v750_v23 }
 0x20f   :  { %791 = vmatpush.msra.mxu0 %v721_v37 }
 0x211   :  { %792 = vmatpush.msra.mxu0 %v718_v33  ;;  %v2225_v33 = vld [vmem:[%s3549_s5 + $0x8] sm:$0x3f] }
 0x213   :  { %793 = vmatpush.msra.mxu0 %v715_v29  ;;  %v1048_v29 = vld [vmem:[%s3545_s9 + $0x48] sm:$0xff] }
 0x215   :  { %794 = vmatpush.msra.mxu0 %v712_v25 }
 0x217   :  { %795 = vmatpush.msra.mxu0 %v683_v39 }
 0x219   :  { %796 = vmatpush.msra.mxu0 %v680_v35 }
 0x21b   :  { %797 = vmatpush.msra.mxu0 %v677_v32  ;;  %v1125_v32 = vld [vmem:[%s3549_s5] sm:$0x3f] }
 0x21c   :  { %2220 = vmatpush.msk.msra.mxu1 %vm819_vm5, %v1125_v32  ;;  %v2271_v32 = vld [vmem:[%s3552_s7 + $0x40] sm:$0x3] }
 0x21d   :  { %798 = vmatpush.msra.mxu0 %v674_v28  ;;  %v1047_v28 = vld [vmem:[%s3545_s9 + $0x40] sm:$0xff] }
 0x21e   :  { %2182 = vmatmul.msk.f32.vlgmr.msra.gmra.mxu0 %vm776_vm4, %v762_v40 }
 0x21f   :  { %2198 = vmatpush.msk.msrb.mxu0 %vm819_vm5, %v2197_v46  ;;  %v1073_v46 = vpop.permute.xlu2 %1072 }
 0x221   :  { %898 = vmatpush.msrb.mxu0 %v2196_v48 }
 0x223   :  { %899 = vmatpush.msrb.mxu0 %v2195_v51 }
 0x225   :  { %900 = vmatpush.msrb.mxu0 %v2194_v54 }
 0x226   :  { %2183 = vmatmul.msk.f32.gmra.mxu0 %vm776_vm4, %v763_v42  ;;  %v1068_v42 = vpop.permute.xlu1 %1067 }
 0x227   :  { %2213 = vmatpush.msk.msra.mxu0 %vm819_vm5, %v2212_v10 }
 0x229   :  { %1039 = vmatpush.msra.mxu0 %v2211_v13 }
 0x22e   :  { %v1254_v10 = vpop.permute.xlu1 %1253 }
 0x29b   :  { %v800_v57 = vpop.f32.mrf.mxu0 }
 0x29c   :  { %v801_v58 = vadd.f32 %v800_v57, %v769_v55 }
 0x29e   :  { %v806_v59 = vmax.f32 %v801_v58, 0.0 }
 0x2a0   :  { %2185 = vmatmul.msk.f32.vlgmr.msra.gmra.mxu2 %vm812_vm6, %v806_v59  ;;  %2192 = vmatmul.msk.f32.vlgmr.msrb.gmra.mxu3 %vm812_vm6, %v806_v59 }
 0x2a1   :  { %2199 = vmatmul.msk.f32.vlgmr.msrb.gmra.mxu0 %vm812_vm6, %v806_v59  ;;  %2226 = vmatpush.msk.msrb.mxu3 %vm819_vm5, %v2225_v33  ;;  %v2264_v33 = vld [vmem:[%s3552_s7 + $0x20] sm:$0xff] }
 0x2a2   :  { %2232 = vmatpush.msk.msrb.mxu0 %vm819_vm5, %v2231_v34  ;;  %v1471_v34 = vld [vmem:[%s3552_s7 + $0x10] sm:$0x3] }
 0x2a3   :  { %v803_v61 = vpop.f32.mrf.mxu0 }
 0x2a4   :  { %v804_v62 = vadd.f32 %v803_v61, %v774_v60 }
 0x2a6   :  { %v807_v63 = vmax.f32 %v804_v62, 0.0 }
 0x2a8   :  { %2186 = vmatmul.msk.f32.gmra.mxu2 %vm812_vm6, %v807_v63  ;;  %2193 = vmatmul.msk.f32.gmra.mxu3 %vm812_vm6, %v807_v63 }
 0x2a9   :  { %2200 = vmatmul.msk.f32.gmra.mxu0 %vm812_vm6, %v807_v63  ;;  %v2252_v63 = vld [vmem:[%s3551_s6 + $0x10] sm:$0x3f]  ;;  %vm1982_vm6 = vmor %vm1981_vm3, %vm555_vm1 }
 0x31e   :  { %v902_v1 = vpop.f32.mrf.mxu0 }
 0x323   :  { %v871_v2 = vpop.f32.mrf.mxu3  ;;  %v840_v3 = vpop.f32.mrf.mxu2 }
 0x326   :  { %v905_v4 = vpop.f32.mrf.mxu0 }
 0x327   :  { %939 = vmatpush.msrb.mxu2 %v905_v4  ;;  %v1241_v4 = vld [vmem:[%s3545_s9 + $0x78] sm:$0xff] }
 0x329   :  { %940 = vmatpush.msrb.mxu2 %v902_v1  ;;  %v1238_v1 = vld [vmem:[%s3545_s9 + $0x60] sm:$0xff] }
 0x32b   :  { %v874_v5 = vpop.f32.mrf.mxu3  ;;  %v843_v6 = vpop.f32.mrf.mxu2 }
 0x32c   :  { %941 = vmatpush.msrb.mxu2 %v874_v5  ;;  %v1311_v5 = vld [vmem:[%s3551_s6] sm:$0x3f] }
 0x32e   :  { %942 = vmatpush.msrb.mxu2 %v871_v2  ;;  %v1239_v2 = vld [vmem:[%s3545_s9 + $0x68] sm:$0xff] }
 0x330   :  { %943 = vmatpush.msrb.mxu2 %v843_v6  ;;  %v1249_v6 = vpop.permute.xlu0 %1248 }
 0x332   :  { %944 = vmatpush.msrb.mxu2 %v840_v3  ;;  %v1240_v3 = vld [vmem:[%s3545_s9 + $0x70] sm:$0xff] }
 0x333   :  { %2201 = vmatmul.msk.f32.vlgmr.msrb.gmra.mxu2 %vm922_vm7, %v908_v7 }
 0x33b   :  { %2202 = vmatmul.msk.f32.gmra.mxu2 %vm922_vm7, %v909_v8 }
 0x3b6   :  { %v946_v15 = vpop.f32.mrf.mxu2 }
 0x3b7   :  { %v947_v16 = vadd.f32 %v946_v15, %v915_v14  ;;  %v1259_v14 = vpop.permute.xlu2 %1258 }
 0x3b9   :  { %v952_v17 = vmax.f32 %v947_v16, 0.0 }
 0x3bb   :  { %2204 = vmatmul.msk.f32.vlgmr.msrb.gmra.mxu1 %vm956_vm8, %v952_v17  ;;  %2209 = vmatmul.msk.f32.vlgmr.msra.gmra.mxu3 %vm956_vm8, %v952_v17 }
 0x3bc   :  { %2214 = vmatmul.msk.f32.vlgmr.msra.gmra.mxu0 %vm956_vm8, %v952_v17  ;;  %2247 = vmatpush.msk.msra.mxu3 %vm819_vm5, %v2246_v0  ;;  %v1647_v0 = vld [vmem:[%s3553_s8 + $0x40] sm:$0xff] }
 0x3bd   :  { %2253 = vmatpush.msk.msra.mxu0 %vm819_vm5, %v2252_v63  ;;  %2241 = vmatpush.msk.msrb.mxu1 %vm819_vm5, %v1311_v5  ;;  %v2299_v63 = vld [vmem:[%s3553_s8 + $0xc0] sm:$0xff]  ;;  %v1566_v5 = vld [vmem:[%s3545_s9 + $0x90] sm:$0xff] }
 0x3be   :  { %v949_v19 = vpop.f32.mrf.mxu2 }
 0x3bf   :  { %v950_v20 = vadd.f32 %v949_v19, %v920_v18  ;;  %v1264_v18 = vpop.permute.xlu0 %1263 }
 0x3c1   :  { %v953_v21 = vmax.f32 %v950_v20, 0.0 }
 0x3c3   :  { %2205 = vmatmul.msk.f32.gmra.mxu1 %vm956_vm8, %v953_v21  ;;  %2210 = vmatmul.msk.f32.gmra.mxu3 %vm956_vm8, %v953_v21 }
 0x3c4   :  { %2215 = vmatmul.msk.f32.gmra.mxu0 %vm956_vm8, %v953_v21 }
 0x438   :  { %v983_v24 = vpop.f32.mrf.mxu1 }
 0x439   :  { %v1041_v22 = vpop.f32.mrf.mxu0 }
 0x43e   :  { %v1012_v23 = vpop.f32.mrf.mxu3 }
 0x440   :  { %v986_v27 = vpop.f32.mrf.mxu1 }
 0x441   :  { %v1044_v25 = vpop.f32.mrf.mxu0 }
 0x442   :  { %1097 = vmatpush.msra.mxu2 %v1044_v25 }
 0x444   :  { %1098 = vmatpush.msra.mxu2 %v1041_v22 }
 0x446   :  { %v1015_v26 = vpop.f32.mrf.mxu3 }
 0x447   :  { %1099 = vmatpush.msra.mxu2 %v1015_v26 }
 0x449   :  { %1100 = vmatpush.msra.mxu2 %v1012_v23 }
 0x44b   :  { %1101 = vmatpush.msra.mxu2 %v986_v27 }
 0x44d   :  { %1102 = vmatpush.msra.mxu2 %v983_v24 }
 0x44e   :  { %2216 = vmatmul.msk.f32.vlgmr.msra.gmra.mxu2 %vm922_vm7, %v1047_v28 }
 0x456   :  { %2217 = vmatmul.msk.f32.gmra.mxu2 %vm922_vm7, %v1048_v29 }
 0x45e   :  { %2218 = vmatmul.msk.f32.gmra.mxu2 %vm922_vm7, %v1049_v30 }
 0x466   :  { %2219 = vmatmul.msk.f32.gmra.mxu2 %vm922_vm7, %v1050_v31  ;;  %v2265_v31 = vld [vmem:[%s3552_s7 + $0x28] sm:$0x3] }
 0x4d1   :  { %v1104_v35 = vpop.f32.mrf.mxu2 }
 0x4d2   :  { %v1105_v36 = vadd.f32 %v1104_v35, %v1058_v56 }
 0x4d4   :  { %v1116_v37 = vmax.f32 %v1105_v36, 0.0 }
 0x4d6   :  { %1121 = vst.msk [vmem:[%s3550_s12] sm:$0xff] %vm1120_vm9, %v1116_v37  ;;  %2221 = vmatmul.msk.f32.vlgmr.msra.gmra.mxu1 %vm1120_vm9, %v1116_v37  ;;  %2227 = vmatmul.msk.f32.vlgmr.msrb.gmra.mxu3 %vm1120_vm9, %v1116_v37 }
 0x4d7   :  { %2233 = vmatmul.msk.f32.vlgmr.msrb.gmra.mxu0 %vm1120_vm9, %v1116_v37  ;;  %2266 = vmatpush.msk.msrb.mxu3 %vm1479_vm10, %v2265_v31  ;;  %v1424_v37 = vld [vmem:[%s3545_s9 + $0x80] sm:$0xff] }
 0x4d8   :  { %2272 = vmatpush.msk.msrb.mxu0 %vm1479_vm10, %v2271_v32  ;;  %2260 = vmatpush.msk.msra.mxu1 %vm1479_vm10, %v1471_v34  ;;  %v2321_v31 = vld [vmem:[%s3553_s8 + $0x120] sm:$0xff]  ;;  %v2322_v32 = vld [vmem:[%s3553_s8 + $0x128] sm:$0xff]  ;;  %v2320_v34 = vld [vmem:[%s3553_s8 + $0x118] sm:$0xff] }
 0x4d9   :  { %v1107_v39 = vpop.f32.mrf.mxu2  ;;  %1527 = vmatpush.msrb.mxu3 %v2264_v33  ;;  %v2319_v33 = vld [vmem:[%s3553_s8 + $0x110] sm:$0xff] }
 0x4da   :  { %v1108_v40 = vadd.f32 %v1107_v39, %v1063_v38  ;;  %v1425_v38 = vld [vmem:[%s3545_s9 + $0x88] sm:$0xff]  ;;  %v2270_v39 = vld [vmem:[%s3552_s7 + $0x38] sm:$0xff] }
 0x4db   :  { %1557 = vmatpush.msrb.mxu0 %v2270_v39  ;;  %v2316_v39 = vld [vmem:[%s3553_s8 + $0xf8] sm:$0xff] }
 0x4dc   :  { %v1117_v41 = vmax.f32 %v1108_v40, 0.0  ;;  %v1470_v40 = vld [vmem:[%s3552_s7 + $0x8] sm:$0xff] }
 0x4dd   :  { %1497 = vmatpush.msra.mxu1 %v1470_v40 }
 0x4de   :  { %1122 = vst.msk [vmem:[%s3550_s12 + $0x8] sm:$0xff] %vm1120_vm9, %v1117_v41  ;;  %2222 = vmatmul.msk.f32.gmra.mxu1 %vm1120_vm9, %v1117_v41  ;;  %2228 = vmatmul.msk.f32.gmra.mxu3 %vm1120_vm9, %v1117_v41 }
 0x4df   :  { %2234 = vmatmul.msk.f32.gmra.mxu0 %vm1120_vm9, %v1117_v41  ;;  %v1469_v41 = vld [vmem:[%s3552_s7] sm:$0xff] }
 0x4e0   :  { %1498 = vmatpush.msra.mxu1 %v1469_v41 }
 0x4e1   :  { %v1110_v43 = vpop.f32.mrf.mxu2 }
 0x4e2   :  { %v1111_v44 = vadd.f32 %v1110_v43, %v1068_v42  ;;  %v2263_v42 = vld [vmem:[%s3552_s7 + $0x18] sm:$0xff]  ;;  %v2269_v43 = vld [vmem:[%s3552_s7 + $0x30] sm:$0xff] }
 0x4e3   :  { %1528 = vmatpush.msrb.mxu3 %v2263_v42  ;;  %1558 = vmatpush.msrb.mxu0 %v2269_v43  ;;  %v2313_v42 = vld [vmem:[%s3553_s8 + $0xe0] sm:$0xff]  ;;  %v2314_v43 = vld [vmem:[%s3553_s8 + $0xe8] sm:$0xff] }
 0x4e4   :  { %v1118_v45 = vmax.f32 %v1111_v44, 0.0  ;;  %v1431_v44 = vpop.permute.xlu1 %1430 }
 0x4e6   :  { %1123 = vst.msk [vmem:[%s3550_s12 + $0x10] sm:$0xff] %vm1120_vm9, %v1118_v45  ;;  %2223 = vmatmul.msk.f32.gmra.mxu1 %vm1120_vm9, %v1118_v45  ;;  %2229 = vmatmul.msk.f32.gmra.mxu3 %vm1120_vm9, %v1118_v45 }
 0x4e7   :  { %2235 = vmatmul.msk.f32.gmra.mxu0 %vm1120_vm9, %v1118_v45 }
 0x4e9   :  { %v1113_v47 = vpop.f32.mrf.mxu2 }
 0x4ea   :  { %v1114_v48 = vadd.f32 %v1113_v47, %v1073_v46 }
 0x4ec   :  { %v1119_v49 = vmax.f32 %v1114_v48, 0.0  ;;  %v1436_v48 = vpop.permute.xlu2 %1435 }
 0x4ee   :  { %1124 = vst.msk [vmem:[%s3550_s12 + $0x18] sm:$0xff] %vm1120_vm9, %v1119_v49  ;;  %2224 = vmatmul.msk.f32.gmra.mxu1 %vm1120_vm9, %v1119_v49  ;;  %2230 = vmatmul.msk.f32.gmra.mxu3 %vm1120_vm9, %v1119_v49 }
 0x4ef   :  { %2236 = vmatmul.msk.f32.gmra.mxu0 %vm1120_vm9, %v1119_v49 }
 0x553   :  { %v1158_v53 = vpop.f32.mrf.mxu1 }
 0x554   :  { %v1226_v50 = vpop.f32.mrf.mxu0 }
 0x559   :  { %v1192_v51 = vpop.f32.mrf.mxu3 }
 0x55b   :  { %v1161_v57 = vpop.f32.mrf.mxu1 }
 0x55c   :  { %v1229_v52 = vpop.f32.mrf.mxu0 }
 0x561   :  { %v1195_v54 = vpop.f32.mrf.mxu3 }
 0x563   :  { %v1164_v60 = vpop.f32.mrf.mxu1 }
 0x564   :  { %v1232_v55 = vpop.f32.mrf.mxu0 }
 0x569   :  { %v1198_v58 = vpop.f32.mrf.mxu3 }
 0x56b   :  { %v1167_v62 = vpop.f32.mrf.mxu1 }
 0x56c   :  { %v1235_v59 = vpop.f32.mrf.mxu0 }
 0x56d   :  { %1282 = vmatpush.msrb.mxu2 %v1235_v59  ;;  %v1652_v59 = vld [vmem:[%s3553_s8 + $0x68] sm:$0x3f] }
 0x56f   :  { %1283 = vmatpush.msrb.mxu2 %v1232_v55 }
 0x571   :  { %1284 = vmatpush.msrb.mxu2 %v1229_v52  ;;  %v1201_v61 = vpop.f32.mrf.mxu3 }
 0x573   :  { %1285 = vmatpush.msrb.mxu2 %v1226_v50 }
 0x575   :  { %1286 = vmatpush.msrb.mxu2 %v1201_v61  ;;  %v1649_v61 = vld [vmem:[%s3553_s8 + $0x50] sm:$0xff] }
 0x577   :  { %1287 = vmatpush.msrb.mxu2 %v1198_v58  ;;  %v1651_v58 = vld [vmem:[%s3553_s8 + $0x60] sm:$0x3f] }
 0x579   :  { %1288 = vmatpush.msrb.mxu2 %v1195_v54 }
 0x57b   :  { %1289 = vmatpush.msrb.mxu2 %v1192_v51 }
 0x57d   :  { %1290 = vmatpush.msrb.mxu2 %v1167_v62  ;;  %v1650_v62 = vld [vmem:[%s3553_s8 + $0x58] sm:$0xff] }
 0x57f   :  { %1291 = vmatpush.msrb.mxu2 %v1164_v60  ;;  %v2301_v60 = vld [vmem:[%s3553_s8 + $0xd0] sm:$0x3f] }
 0x581   :  { %1292 = vmatpush.msrb.mxu2 %v1161_v57 }
 0x583   :  { %1293 = vmatpush.msrb.mxu2 %v1158_v53 }
 0x584   :  { %2237 = vmatmul.msk.f32.vlgmr.msrb.gmra.mxu2 %vm776_vm4, %v1238_v1  ;;  %v1648_v1 = vld [vmem:[%s3553_s8 + $0x48] sm:$0xff] }
 0x58c   :  { %2238 = vmatmul.msk.f32.gmra.mxu2 %vm776_vm4, %v1239_v2  ;;  %v2297_v2 = vld [vmem:[%s3553_s8 + $0xb0] sm:$0xff] }
 0x594   :  { %2239 = vmatmul.msk.f32.gmra.mxu2 %vm776_vm4, %v1240_v3 }
 0x59c   :  { %2240 = vmatmul.msk.f32.gmra.mxu2 %vm776_vm4, %v1241_v4  ;;  %v1645_v4 = vld [vmem:[%s3553_s8 + $0x30] sm:$0xff] }
 0x607   :  { %v1295_v7 = vpop.f32.mrf.mxu2 }
 0x608   :  { %v1296_v8 = vadd.f32 %v1295_v7, %v1249_v6  ;;  %v1646_v6 = vld [vmem:[%s3553_s8 + $0x38] sm:$0xff] }
 0x609   :  { %v2302_v7 = vld [vmem:[%s3553_s8 + $0xd8] sm:$0x3f] }
 0x60a   :  { %v1307_v9 = vmax.f32 %v1296_v8, 0.0  ;;  %v2295_v8 = vld [vmem:[%s3553_s8 + $0xa0] sm:$0xff] }
 0x60c   :  { %2242 = vmatmul.msk.f32.vlgmr.msrb.gmra.mxu1 %vm1120_vm9, %v1307_v9  ;;  %2248 = vmatmul.msk.f32.vlgmr.msra.gmra.mxu3 %vm1120_vm9, %v1307_v9 }
 0x60d   :  { %2254 = vmatmul.msk.f32.vlgmr.msra.gmra.mxu0 %vm1120_vm9, %v1307_v9  ;;  %2279 = vmatpush.msk.msrb.mxu1 %vm819_vm5, %v1651_v58  ;;  %v2300_v9 = vld [vmem:[%s3553_s8 + $0xc8] sm:$0xff] }
 0x60e   :  { %2284 = vmatpush.msk.msra.mxu3 %vm819_vm5, %v1652_v59  ;;  %2303 = vmatpush.msk.msra.mxu0 %vm819_vm5, %v2301_v60 }
 0x60f   :  { %v1298_v11 = vpop.f32.mrf.mxu2  ;;  %1682 = vmatpush.msrb.mxu1 %v1649_v61 }
 0x610   :  { %v1299_v12 = vadd.f32 %v1298_v11, %v1254_v10  ;;  %1711 = vmatpush.msra.mxu3 %v1650_v62  ;;  %1761 = vmatpush.msra.mxu0 %v2299_v63  ;;  %v2298_v10 = vld [vmem:[%s3553_s8 + $0xb8] sm:$0xff]  ;;  %v2296_v11 = vld [vmem:[%s3553_s8 + $0xa8] sm:$0xff] }
 0x611   :  { %1683 = vmatpush.msrb.mxu1 %v1647_v0 }
 0x612   :  { %v1308_v13 = vmax.f32 %v1299_v12, 0.0  ;;  %1712 = vmatpush.msra.mxu3 %v1648_v1  ;;  %1762 = vmatpush.msra.mxu0 %v2297_v2  ;;  %v1567_v12 = vld [vmem:[%s3545_s9 + $0x98] sm:$0xff] }
 0x613   :  { %1684 = vmatpush.msrb.mxu1 %v1645_v4 }
 0x614   :  { %2243 = vmatmul.msk.f32.gmra.mxu1 %vm1120_vm9, %v1308_v13  ;;  %2249 = vmatmul.msk.f32.gmra.mxu3 %vm1120_vm9, %v1308_v13 }
 0x615   :  { %2255 = vmatmul.msk.f32.gmra.mxu0 %vm1120_vm9, %v1308_v13  ;;  %1713 = vmatpush.msra.mxu3 %v1646_v6  ;;  %v1568_v13 = vld [vmem:[%s3545_s9 + $0xa0] sm:$0xff] }
 0x616   :  { %1763 = vmatpush.msra.mxu0 %v2295_v8 }
 0x617   :  { %v1301_v15 = vpop.f32.mrf.mxu2 }
 0x618   :  { %v1302_v16 = vadd.f32 %v1301_v15, %v1259_v14  ;;  %v1569_v14 = vld [vmem:[%s3545_s9 + $0xa8] sm:$0xff]  ;;  %v1643_v15 = vld [vmem:[%s3553_s8 + $0x20] sm:$0xff] }
 0x619   :  { %1685 = vmatpush.msrb.mxu1 %v1643_v15 }
 0x61a   :  { %v1309_v17 = vmax.f32 %v1302_v16, 0.0  ;;  %v1644_v16 = vld [vmem:[%s3553_s8 + $0x28] sm:$0xff] }
 0x61b   :  { %1714 = vmatpush.msra.mxu3 %v1644_v16 }
 0x61c   :  { %2244 = vmatmul.msk.f32.gmra.mxu1 %vm1120_vm9, %v1309_v17  ;;  %2250 = vmatmul.msk.f32.gmra.mxu3 %vm1120_vm9, %v1309_v17 }
 0x61d   :  { %2256 = vmatmul.msk.f32.gmra.mxu0 %vm1120_vm9, %v1309_v17  ;;  %v2293_v17 = vld [vmem:[%s3553_s8 + $0x90] sm:$0xff] }
 0x61e   :  { %1764 = vmatpush.msra.mxu0 %v2293_v17 }
 0x61f   :  { %v1304_v19 = vpop.f32.mrf.mxu2 }
 0x620   :  { %v1305_v20 = vadd.f32 %v1304_v19, %v1264_v18  ;;  %v2294_v18 = vld [vmem:[%s3553_s8 + $0x98] sm:$0xff]  ;;  %v1641_v19 = vld [vmem:[%s3553_s8 + $0x10] sm:$0xff] }
 0x621   :  { %1686 = vmatpush.msrb.mxu1 %v1641_v19 }
 0x622   :  { %v1310_v21 = vmax.f32 %v1305_v20, 0.0  ;;  %v1642_v20 = vld [vmem:[%s3553_s8 + $0x18] sm:$0xff] }
 0x623   :  { %1715 = vmatpush.msra.mxu3 %v1642_v20 }
 0x624   :  { %2245 = vmatmul.msk.f32.gmra.mxu1 %vm1120_vm9, %v1310_v21  ;;  %2251 = vmatmul.msk.f32.gmra.mxu3 %vm1120_vm9, %v1310_v21 }
 0x625   :  { %2257 = vmatmul.msk.f32.gmra.mxu0 %vm1120_vm9, %v1310_v21  ;;  %v2291_v21 = vld [vmem:[%s3553_s8 + $0x80] sm:$0xff] }
 0x626   :  { %1765 = vmatpush.msra.mxu0 %v2291_v21 }
 0x689   :  { %v1344_v25 = vpop.f32.mrf.mxu1 }
 0x68a   :  { %v1412_v22 = vpop.f32.mrf.mxu0 }
 0x68f   :  { %v1378_v23 = vpop.f32.mrf.mxu3 }
 0x691   :  { %v1347_v28 = vpop.f32.mrf.mxu1 }
 0x692   :  { %v1415_v24 = vpop.f32.mrf.mxu0 }
 0x697   :  { %v1381_v26 = vpop.f32.mrf.mxu3 }
 0x699   :  { %v1350_v56 = vpop.f32.mrf.mxu1 }
 0x69a   :  { %v1418_v27 = vpop.f32.mrf.mxu0 }
 0x69f   :  { %v1384_v29 = vpop.f32.mrf.mxu3 }
 0x6a1   :  { %v1353_v36 = vpop.f32.mrf.mxu1 }
 0x6a2   :  { %v1421_v30 = vpop.f32.mrf.mxu0 }
 0x6a3   :  { %1448 = vmatpush.msra.mxu2 %v1421_v30  ;;  %v2324_v30 = vld [vmem:[%s3553_s8 + $0x138] sm:$0xff] }
 0x6a5   :  { %1449 = vmatpush.msra.mxu2 %v1418_v27  ;;  %v2325_v27 = vld [vmem:[%s3553_s8 + $0x140] sm:$0x3f] }
 0x6a7   :  { %1450 = vmatpush.msra.mxu2 %v1415_v24  ;;  %v1387_v35 = vpop.f32.mrf.mxu3  ;;  %v1640_v24 = vld [vmem:[%s3553_s8 + $0x8] sm:$0xff] }
 0x6a8   :  { %1716 = vmatpush.msra.mxu3 %v1640_v24 }
 0x6a9   :  { %1451 = vmatpush.msra.mxu2 %v1412_v22  ;;  %v2292_v22 = vld [vmem:[%s3553_s8 + $0x88] sm:$0xff] }
 0x6ab   :  { %1452 = vmatpush.msra.mxu2 %v1387_v35  ;;  %v2318_v35 = vld [vmem:[%s3553_s8 + $0x108] sm:$0xff] }
 0x6ad   :  { %1453 = vmatpush.msra.mxu2 %v1384_v29  ;;  %v2323_v29 = vld [vmem:[%s3553_s8 + $0x130] sm:$0xff] }
 0x6af   :  { %1454 = vmatpush.msra.mxu2 %v1381_v26  ;;  %v2290_v26 = vld [vmem:[%s3553_s8 + $0x78] sm:$0xff] }
 0x6b1   :  { %1455 = vmatpush.msra.mxu2 %v1378_v23  ;;  %v1639_v23 = vld [vmem:[%s3553_s8] sm:$0xff] }
 0x6b2   :  { %1687 = vmatpush.msrb.mxu1 %v1639_v23 }
 0x6b3   :  { %1456 = vmatpush.msra.mxu2 %v1353_v36  ;;  %v1577_v36 = vpop.permute.xlu0 %1576 }
 0x6b5   :  { %1457 = vmatpush.msra.mxu2 %v1350_v56  ;;  %v2317_v56 = vld [vmem:[%s3553_s8 + $0x100] sm:$0xff] }
 0x6b7   :  { %1458 = vmatpush.msra.mxu2 %v1347_v28  ;;  %v2326_v28 = vld [vmem:[%s3553_s8 + $0x148] sm:$0x3f] }
 0x6b9   :  { %1459 = vmatpush.msra.mxu2 %v1344_v25  ;;  %v2289_v25 = vld [vmem:[%s3553_s8 + $0x70] sm:$0xff] }
 0x6ba   :  { %2258 = vmatmul.msk.f32.vlgmr.msra.gmra.mxu2 %vm776_vm4, %v1424_v37  ;;  %1766 = vmatpush.msra.mxu0 %v2289_v25 }
 0x6c2   :  { %2259 = vmatmul.msk.f32.gmra.mxu2 %vm776_vm4, %v1425_v38  ;;  %v2315_v38 = vld [vmem:[%s3553_s8 + $0xf0] sm:$0xff] }
 0x73d   :  { %v1461_v45 = vpop.f32.mrf.mxu2 }
 0x73e   :  { %v1462_v46 = vadd.f32 %v1461_v45, %v1431_v44  ;;  %v1582_v44 = vpop.permute.xlu1 %1581 }
 0x740   :  { %v1467_v47 = vmax.f32 %v1462_v46, 0.0 }
 0x742   :  { %2261 = vmatmul.msk.f32.vlgmr.msra.gmra.mxu1 %vm1472_vm11, %v1467_v47  ;;  %2267 = vmatmul.msk.f32.vlgmr.msrb.gmra.mxu3 %vm1472_vm11, %v1467_v47 }
 0x743   :  { %2273 = vmatmul.msk.f32.vlgmr.msrb.gmra.mxu0 %vm1472_vm11, %v1467_v47  ;;  %2327 = vmatpush.msk.msra.mxu1 %vm819_vm5, %v2325_v27 }
 0x744   :  { %2332 = vmatpush.msk.msrb.mxu3 %vm819_vm5, %v2326_v28 }
 0x745   :  { %v1464_v49 = vpop.f32.mrf.mxu2  ;;  %1840 = vmatpush.msra.mxu1 %v2323_v29 }
 0x746   :  { %v1465_v50 = vadd.f32 %v1464_v49, %v1436_v48  ;;  %1869 = vmatpush.msrb.mxu3 %v2324_v30  ;;  %v1587_v48 = vpop.permute.xlu2 %1586  ;;  %v1893_v19 = vpop.permute.xlu1 %1892 }
 0x747   :  { %1841 = vmatpush.msra.mxu1 %v2321_v31 }
 0x748   :  { %v1468_v51 = vmax.f32 %v1465_v50, 0.0  ;;  %1870 = vmatpush.msrb.mxu3 %v2322_v32 }
 0x749   :  { %1842 = vmatpush.msra.mxu1 %v2319_v33 }
 0x74a   :  { %2262 = vmatmul.msk.f32.gmra.mxu1 %vm1472_vm11, %v1468_v51  ;;  %2268 = vmatmul.msk.f32.gmra.mxu3 %vm1472_vm11, %v1468_v51 }
 0x74b   :  { %2274 = vmatmul.msk.f32.gmra.mxu0 %vm1472_vm11, %v1468_v51  ;;  %1871 = vmatpush.msrb.mxu3 %v2320_v34 }
 0x74c   :  { %1843 = vmatpush.msra.mxu1 %v2317_v56 }
 0x74d   :  { %1872 = vmatpush.msrb.mxu3 %v2318_v35 }
 0x74e   :  { %1844 = vmatpush.msra.mxu1 %v2315_v38 }
 0x74f   :  { %1873 = vmatpush.msrb.mxu3 %v2316_v39 }
 0x750   :  { %1845 = vmatpush.msra.mxu1 %v2313_v42 }
 0x751   :  { %1874 = vmatpush.msrb.mxu3 %v2314_v43 }
 0x7bf   :  { %v1500_v54 = vpop.f32.mrf.mxu1 }
 0x7c0   :  { %v1560_v52 = vpop.f32.mrf.mxu0 }
 0x7c5   :  { %v1530_v53 = vpop.f32.mrf.mxu3 }
 0x7c7   :  { %v1503_v3 = vpop.f32.mrf.mxu1 }
 0x7c8   :  { %v1563_v55 = vpop.f32.mrf.mxu0 }
 0x7c9   :  { %1616 = vmatpush.msrb.mxu2 %v1563_v55 }
 0x7cb   :  { %1617 = vmatpush.msrb.mxu2 %v1560_v52  ;;  %v1592_v52 = vpop.permute.xlu0 %1591 }
 0x7cd   :  { %v1533_v57 = vpop.f32.mrf.mxu3 }
 0x7ce   :  { %1618 = vmatpush.msrb.mxu2 %v1533_v57 }
 0x7d0   :  { %1619 = vmatpush.msrb.mxu2 %v1530_v53 }
 0x7d2   :  { %1620 = vmatpush.msrb.mxu2 %v1503_v3 }
 0x7d4   :  { %1621 = vmatpush.msrb.mxu2 %v1500_v54 }
 0x7d5   :  { %2275 = vmatmul.msk.f32.vlgmr.msrb.gmra.mxu2 %vm922_vm7, %v1566_v5 }
 0x7d6   :  { %2308 = vmatpush.msk.msra.mxu2 %vm819_vm5, %v2302_v7 }
 0x7d8   :  { %1790 = vmatpush.msra.mxu2 %v2300_v9 }
 0x7da   :  { %1791 = vmatpush.msra.mxu2 %v2298_v10 }
 0x7dc   :  { %1792 = vmatpush.msra.mxu2 %v2296_v11 }
 0x7dd   :  { %2276 = vmatmul.msk.f32.gmra.mxu2 %vm922_vm7, %v1567_v12 }
 0x7de   :  { %1793 = vmatpush.msra.mxu2 %v2294_v18 }
 0x7e0   :  { %1794 = vmatpush.msra.mxu2 %v2292_v22 }
 0x7e2   :  { %1795 = vmatpush.msra.mxu2 %v2290_v26 }
 0x7e5   :  { %2277 = vmatmul.msk.f32.gmra.mxu2 %vm922_vm7, %v1568_v13 }
 0x7ed   :  { %2278 = vmatmul.msk.f32.gmra.mxu2 %vm922_vm7, %v1569_v14  ;;  %v1888_v14 = vld [vmem:[%s3545_s9 + $0xb0] sm:$0xf] }
 0x858   :  { %v1623_v37 = vpop.f32.mrf.mxu2 }
 0x859   :  { %v1624_v40 = vadd.f32 %v1623_v37, %v1577_v36 }
 0x85b   :  { %v1635_v41 = vmax.f32 %v1624_v40, 0.0 }
 0x85d   :  { %2280 = vmatmul.msk.f32.vlgmr.msrb.gmra.mxu1 %vm1653_vm12, %v1635_v41  ;;  %2285 = vmatmul.msk.f32.vlgmr.msra.gmra.mxu3 %vm1653_vm12, %v1635_v41 }
 0x85e   :  { %2304 = vmatmul.msk.f32.vlgmr.msra.gmra.mxu0 %vm1653_vm12, %v1635_v41  ;;  %2309 = vmatmul.msk.f32.vlgmr.msra.gmra.mxu2 %vm1653_vm12, %v1635_v41 }
 0x860   :  { %v1626_v45 = vpop.f32.mrf.mxu2 }
 0x861   :  { %v1627_v46 = vadd.f32 %v1626_v45, %v1582_v44 }
 0x863   :  { %v1636_v47 = vmax.f32 %v1627_v46, 0.0 }
 0x865   :  { %2281 = vmatmul.msk.f32.gmra.mxu1 %vm1653_vm12, %v1636_v47  ;;  %2286 = vmatmul.msk.f32.gmra.mxu3 %vm1653_vm12, %v1636_v47 }
 0x866   :  { %2305 = vmatmul.msk.f32.gmra.mxu0 %vm1653_vm12, %v1636_v47  ;;  %2310 = vmatmul.msk.f32.gmra.mxu2 %vm1653_vm12, %v1636_v47 }
 0x868   :  { %v1629_v49 = vpop.f32.mrf.mxu2 }
 0x869   :  { %v1630_v50 = vadd.f32 %v1629_v49, %v1587_v48 }
 0x86b   :  { %v1637_v51 = vmax.f32 %v1630_v50, 0.0 }
 0x86d   :  { %2282 = vmatmul.msk.f32.gmra.mxu1 %vm1653_vm12, %v1637_v51  ;;  %2287 = vmatmul.msk.f32.gmra.mxu3 %vm1653_vm12, %v1637_v51 }
 0x86e   :  { %2306 = vmatmul.msk.f32.gmra.mxu0 %vm1653_vm12, %v1637_v51  ;;  %2311 = vmatmul.msk.f32.gmra.mxu2 %vm1653_vm12, %v1637_v51 }
 0x870   :  { %v1632_v53 = vpop.f32.mrf.mxu2 }
 0x871   :  { %v1633_v54 = vadd.f32 %v1632_v53, %v1592_v52 }
 0x873   :  { %v1638_v55 = vmax.f32 %v1633_v54, 0.0 }
 0x875   :  { %2283 = vmatmul.msk.f32.gmra.mxu1 %vm1653_vm12, %v1638_v55  ;;  %2288 = vmatmul.msk.f32.gmra.mxu3 %vm1653_vm12, %v1638_v55 }
 0x876   :  { %2307 = vmatmul.msk.f32.gmra.mxu0 %vm1653_vm12, %v1638_v55  ;;  %2312 = vmatmul.msk.f32.gmra.mxu2 %vm1653_vm12, %v1638_v55 }
 0x87d   :  { %2328 = vmatmul.msk.f32.vlgmr.msra.gmra.mxu1 %vm1653_vm12, %v1635_v41  ;;  %2333 = vmatmul.msk.f32.vlgmr.msrb.gmra.mxu3 %vm1653_vm12, %v1635_v41 }
 0x885   :  { %2329 = vmatmul.msk.f32.gmra.mxu1 %vm1653_vm12, %v1636_v47  ;;  %2334 = vmatmul.msk.f32.gmra.mxu3 %vm1653_vm12, %v1636_v47 }
 0x88d   :  { %2330 = vmatmul.msk.f32.gmra.mxu1 %vm1653_vm12, %v1637_v51  ;;  %2335 = vmatmul.msk.f32.gmra.mxu3 %vm1653_vm12, %v1637_v51 }
 0x895   :  { %2331 = vmatmul.msk.f32.gmra.mxu1 %vm1653_vm12, %v1638_v55  ;;  %2336 = vmatmul.msk.f32.gmra.mxu3 %vm1653_vm12, %v1638_v55 }
 0x8da   :  { %v1689_v57 = vpop.f32.mrf.mxu1 }
 0x8db   :  { %v1768_v1 = vpop.f32.mrf.mxu0 }
 0x8e0   :  { %v1718_v59 = vpop.f32.mrf.mxu3 }
 0x8e1   :  { %v1797_v9 = vpop.f32.mrf.mxu2 }
 0x8e2   :  { %v1692_v58 = vpop.f32.mrf.mxu1 }
 0x8e3   :  { %v1771_v4 = vpop.f32.mrf.mxu0 }
 0x8e8   :  { %v1721_v61 = vpop.f32.mrf.mxu3 }
 0x8e9   :  { %v1800_v12 = vpop.f32.mrf.mxu2 }
 0x8ea   :  { %v1695_v60 = vpop.f32.mrf.mxu1 }
 0x8eb   :  { %v1774_v7 = vpop.f32.mrf.mxu0 }
 0x8f0   :  { %v1724_v63 = vpop.f32.mrf.mxu3 }
 0x8f1   :  { %v1803_v15 = vpop.f32.mrf.mxu2 }
 0x8f2   :  { %v1698_v62 = vpop.f32.mrf.mxu1 }
 0x8f3   :  { %v1777_v11 = vpop.f32.mrf.mxu0 }
 0x8f8   :  { %v1727_v2 = vpop.f32.mrf.mxu3 }
 0x8f9   :  { %v1806_v17 = vpop.f32.mrf.mxu2 }
 0x8fa   :  { %v1847_v0 = vpop.f32.mrf.mxu1 }
 0x900   :  { %v1876_v6 = vpop.f32.mrf.mxu3 }
 0x902   :  { %v1850_v3 = vpop.f32.mrf.mxu1 }
 0x908   :  { %v1879_v10 = vpop.f32.mrf.mxu3 }
 0x90a   :  { %v1853_v5 = vpop.f32.mrf.mxu1 }
 0x910   :  { %v1882_v13 = vpop.f32.mrf.mxu3 }
 0x912   :  { %v1856_v8 = vpop.f32.mrf.mxu1 }
 0x913   :  { %1902 = vmatpush.msrb.mxu0 %v1856_v8 }
 0x915   :  { %1903 = vmatpush.msrb.mxu0 %v1853_v5 }
 0x917   :  { %1904 = vmatpush.msrb.mxu0 %v1850_v3 }
 0x918   :  { %v1885_v16 = vpop.f32.mrf.mxu3 }
 0x919   :  { %1905 = vmatpush.msrb.mxu0 %v1847_v0 }
 0x91b   :  { %1906 = vmatpush.msrb.mxu0 %v1777_v11 }
 0x91d   :  { %1907 = vmatpush.msrb.mxu0 %v1774_v7 }
 0x91f   :  { %1908 = vmatpush.msrb.mxu0 %v1771_v4 }
 0x921   :  { %1909 = vmatpush.msrb.mxu0 %v1768_v1 }
 0x923   :  { %1910 = vmatpush.msrb.mxu0 %v1698_v62 }
 0x925   :  { %1911 = vmatpush.msrb.mxu0 %v1695_v60 }
 0x927   :  { %1912 = vmatpush.msrb.mxu0 %v1692_v58 }
 0x929   :  { %1913 = vmatpush.msrb.mxu0 %v1689_v57 }
 0x92a   :  { %2337 = vmatmul.msk.f32.vlgmr.msrb.gmra.mxu0 %vm776_vm4, %v1888_v14 }
 0x92b   :  { %1922 = vmatpush.msra.mxu0 %v1885_v16 }
 0x92d   :  { %1923 = vmatpush.msra.mxu0 %v1882_v13 }
 0x92f   :  { %1924 = vmatpush.msra.mxu0 %v1879_v10 }
 0x931   :  { %1925 = vmatpush.msra.mxu0 %v1876_v6 }
 0x933   :  { %1926 = vmatpush.msra.mxu0 %v1806_v17 }
 0x935   :  { %1927 = vmatpush.msra.mxu0 %v1803_v15 }
 0x937   :  { %1928 = vmatpush.msra.mxu0 %v1800_v12 }
 0x939   :  { %1929 = vmatpush.msra.mxu0 %v1797_v9 }
 0x93b   :  { %1930 = vmatpush.msra.mxu0 %v1727_v2 }
 0x93d   :  { %1931 = vmatpush.msra.mxu0 %v1724_v63 }
 0x93f   :  { %1932 = vmatpush.msra.mxu0 %v1721_v61 }
 0x941   :  { %1933 = vmatpush.msra.mxu0 %v1718_v59 }
 0x942   :  { %2338 = vmatmul.msk.f32.vlgmr.msra.gmra.mxu0 %vm776_vm4, %v1888_v14 }
 0x9a7   :  { %v1915_v18 = vpop.f32.mrf.mxu0 }
 0x9a8   :  { %v1916_v20 = vadd.f32 %v1915_v18, %v1893_v19 }
 0x9aa   :  { %v2339_v21 = vmul.f32 -1.442695, %v1916_v20 }
 0x9ac   :  { %2345 = vpow2.f32 %v2339_v21 }
 0x9b2   :  { %v2346_v22 = vpop.eup %2345 }
 0x9b3   :  { %v1944_v23 = vadd.f32 1.0, %v2346_v22 }
 0x9b5   :  { %2347 = vrcp.f32 %v1944_v23  ;;  %vm1951_vm15 = vweird.f32 %v1944_v23  ;;  %v1957_v39 = vand.u32 2147483648, %v1944_v23  ;;  %v1955_v41 = vand.u32 2147483647, %v1944_v23 }
 0x9b7   :  { %v1958_v46 = vor.u32 1.1754944e-38, %v1957_v39  ;;  %vm1956_vm7 = vcmp.eq.f32.partialorder %v1955_v41, 8.507059e+37 }
 0x9bb   :  { %v2348_v27 = vpop.eup %2347 }
 0x9bc   :  { %v1947_v30 = vmul.f32 %v2348_v27, %v1944_v23  ;;  %vm1952_vm13 = vweird.f32 %v2348_v27 }
 0x9bd   :  { %vm3531_vm0 = vmor %vm1951_vm15, %vm1952_vm13 }
 0x9be   :  { %v1948_v31 = vsub.f32 1.0, %v1947_v30 }
 0x9bf   :  { %v1935_v24 = vpop.f32.mrf.mxu0 }
 0x9c0   :  { %v1936_v25 = vadd.f32 %v1935_v24, %v1893_v19  ;;  %v1949_v33 = vmul.f32 %v2348_v27, %v1948_v31 }
 0x9c2   :  { %v2340_v26 = vmul.f32 -1.442695, %v1936_v25  ;;  %v1950_v36 = vadd.f32 %v2348_v27, %v1949_v33 }
 0x9c4   :  { %2349 = vpow2.f32 %v2340_v26  ;;  %v1954_v44 = vsel %vm3531_vm0, %v2348_v27, %v1950_v36 }
 0x9c5   :  { %v1959_v49 = vsel %vm1956_vm7, %v1958_v46, %v1954_v44 }
 0x9ca   :  { %v2350_v28 = vpop.eup %2349 }
 0x9cb   :  { %v1945_v29 = vadd.f32 1.0, %v2350_v28 }
 0x9cd   :  { %2351 = vrcp.f32 %v1945_v29  ;;  %v1972_v35 = vand.u32 2147483648, %v1945_v29  ;;  %v1970_v38 = vand.u32 2147483647, %v1945_v29  ;;  %vm1966_vm2 = vweird.f32 %v1945_v29 }
 0x9cf   :  { %v1973_v43 = vor.u32 1.1754944e-38, %v1972_v35  ;;  %vm1971_vm5 = vcmp.eq.f32.partialorder %v1970_v38, 8.507059e+37 }
 0x9d3   :  { %v2352_v32 = vpop.eup %2351 }
 0x9d4   :  { %v1962_v34 = vmul.f32 %v2352_v32, %v1945_v29  ;;  %vm1967_vm14 = vweird.f32 %v2352_v32 }
 0x9d5   :  { %vm1968_vm4 = vmor %vm1966_vm2, %vm1967_vm14 }
 0x9d6   :  { %v1963_v56 = vsub.f32 1.0, %v1962_v34 }
 0x9d8   :  { %v1964_v37 = vmul.f32 %v2352_v32, %v1963_v56 }
 0x9da   :  { %v1965_v42 = vadd.f32 %v2352_v32, %v1964_v37 }
 0x9dc   :  { %v1969_v45 = vsel %vm1968_vm4, %v2352_v32, %v1965_v42 }
 0x9dd   :  { %v1974_v47 = vsel %vm1971_vm5, %v1973_v43, %v1969_v45 }
 0x9de   :  { %v1978_v48 = vrot.slane %v1974_v47, 4 }
 0x9e0   :  { %v1979_v50 = vsel %vm555_vm1, %v1959_v49, %v1978_v48 }
 0x9e1   :  { %1983 = vst.msk [vmem:[%s3554_s11] sm:$0xff] %vm1982_vm6, %v1979_v50 }

</bundles_post_ra>
